<compile_context>
chip_gen: v5e
topology: v5e:2x2
jax: 0.10.0
libtpu: 0.0.40
codegen_flags: <defaults>
</compile_context>

<pallas_src>
import numpy as np

import jax
import jax.numpy as jnp
from jax import lax
from jax.experimental import pallas as pl
from jax.experimental.pallas import tpu as pltpu


# ----------------------------------------------------------------------------------
# Host-side schedule glue (identical math to the PyTorch module, numpy only)
# ----------------------------------------------------------------------------------
def rescale_zero_terminal_snr(betas):
    alphas = 1.0 - betas
    alphas_cumprod = np.cumprod(alphas, axis=0)
    alphas_bar_sqrt = np.sqrt(alphas_cumprod)
    alphas_bar_sqrt_0 = alphas_bar_sqrt[0].copy()
    alphas_bar_sqrt_T = alphas_bar_sqrt[-1].copy()
    alphas_bar_sqrt -= alphas_bar_sqrt_T
    alphas_bar_sqrt *= alphas_bar_sqrt_0 / (alphas_bar_sqrt_0 - alphas_bar_sqrt_T)
    alphas_bar = alphas_bar_sqrt ** 2
    alphas = alphas_bar[1:] / alphas_bar[:-1]
    alphas = np.concatenate([alphas_bar[0:1], alphas])
    betas = 1 - alphas
    return betas


# Per-step scalar layout in the SMEM coefficient table (stride 8):
#   [sqrt_acp, sqrt_1macp, tsnr_rescale, sqrt_a_prev, dir_coef, sigma, 0.001*t, pad]
COEF_STRIDE = 8


# ----------------------------------------------------------------------------------
# Fused whole-loop Pallas kernel (no grid; in-kernel unrolled step loop)
# ----------------------------------------------------------------------------------
def _make_fused_loop_kernel(steps, B, C, S, guidance_rescale):
    BC = B * C
    n_el = float(C * S)                       # torch.std over dims (C, H, W)
    inv_n = np.float32(1.0 / n_el)
    inv_nm1 = np.float32(1.0 / (n_el - 1.0))  # unbiased (N-1), matching torch.std default
    gr = np.float32(guidance_rescale)
    one_m_gr = np.float32(1.0 - guidance_rescale)

    def kernel(coef_ref, x0_ref, z_ref, w_ref, g_ref, c_ref, x_ref):
        # Loop-invariant operands, loaded once.
        w = w_ref[...]                        # (BC, BC) block-diag conv1x1 mixing
        g_lhs = g_ref[...]                    # (3*BC, BC) stacked grouping [M; M*bp; M*bo]
        m_mat = g_lhs[0:BC, :]                # plain per-sample grouping matrix M
        bias_o = c_ref[:, 0:1]                # per-row CFG-combined bias (BC, 1)
        kp1 = c_ref[:, 1:2]                   # S * sum_c bias_p     (per-sample, bcast)
        kp2 = c_ref[:, 2:3]                   # S * sum_c bias_p^2
        ko1 = c_ref[:, 3:4]                   # S * sum_c bias_o
        ko2 = c_ref[:, 4:5]                   # S * sum_c bias_o^2

        def body(i, x):
            base = i * COEF_STRIDE
            sa = coef_ref[base + 0]           # sqrt_alphas_cumprod[t]
            sb = coef_ref[base + 1]           # sqrt_one_minus_alphas_cumprod[t]
            tsnr_rescale = coef_ref[base + 2]
            sqrt_a_prev = coef_ref[base + 3]
            dir_coef = coef_ref[base + 4]
            sigma = coef_ref[base + 5]
            t_term = coef_ref[base + 6]

            # Surrogate UNet channel mixing, shared by both CFG branches (their
            # difference is a per-row constant folded into bias_p / bias_o).
            # TODO(synk): cast w/x to bf16 for this dot if the channel mixer grows.
            mixed = jnp.dot(w, x, preferred_element_type=jnp.float32) + t_term

            # Raw per-row stats of `mixed` (only elementwise square / reductions left).
            sm = jnp.sum(mixed, axis=-1, keepdims=True)            # (BC, 1)
            sm2 = jnp.sum(mixed * mixed, axis=-1, keepdims=True)   # (BC, 1)

            # Per-sample grouping: one stacked dot gives sum_c sm, sum_c bp*sm and
            # sum_c bo*sm; one more dot gives sum_c sm2.  (4 tiny matmuls -> 2.)
            gsm = jnp.dot(g_lhs, sm, preferred_element_type=jnp.float32)   # (3BC, 1)
            g_sm = gsm[0:BC, :]
            g_bpsm = gsm[BC:2 * BC, :]
            g_bosm = gsm[2 * BC:3 * BC, :]
            g_sm2 = jnp.dot(m_mat, sm2, preferred_element_type=jnp.float32)

            # Grouped totals of p = mixed + bias_p and o = mixed + bias_o.
            tp1 = g_sm + kp1
            tp2 = g_sm2 + 2.0 * g_bpsm + kp2
            to1 = g_sm + ko1
            to2 = g_sm2 + 2.0 * g_bosm + ko2

            # rescale_noise_cfg: per-sample std ratio (unbiased, like torch.std).
            # NOTE: single-pass sum/sumsq variance; clamped at 0 before sqrt.  var_o=0
            # gives inf, matching the reference's divide-by-zero behavior.
            var_p = jnp.maximum((tp2 - tp1 * tp1 * inv_n) * inv_nm1, 0.0)
            var_o = jnp.maximum((to2 - to1 * to1 * inv_n) * inv_nm1, 0.0)
            ratio = jnp.sqrt(var_p) * lax.rsqrt(var_o)              # std_text/std_cfg (EUP)

            o = mixed + bias_o                                      # CFG-combined output
            v = o * (gr * ratio + one_m_gr)                         # guidance-rescaled

            # Fused v-parameterized DDIM + dynamic-TSNR update.
            e_t = sa * v + sb * x
            pred_x0 = (sa * x - sb * v) * tsnr_rescale
            return sqrt_a_prev * pred_x0 + dir_coef * e_t + sigma * z_ref[i]

        x = x0_ref[...]
        if steps <= 32:
            # Fully unrolled: static SMEM/z indices, maximum scheduler visibility.
            for i in range(steps):
                x = body(i, x)
        else:
            x = lax.fori_loop(0, steps, body, x)
        x_ref[...] = x

    return kernel


def fused_sampler_loop(x0, z, coefs, w_blk, g_lhs, consts, *, steps, B, C,
                       guidance_rescale):
    BC, S = x0.shape
    kernel = _make_fused_loop_kernel(steps, B, C, S, guidance_rescale)

    # Budget VMEM explicitly (z is the only input that scales with steps*S).
    z_bytes = int(np.prod(z.shape)) * 4
    vmem_limit = int(min(64 * 2 ** 20, max(16 * 2 ** 20, 2 * z_bytes + (4 << 20))))

    return pl.pallas_call(
        kernel,
        out_shape=jax.ShapeDtypeStruct((BC, S), jnp.float32),
        in_specs=[
            pl.BlockSpec(memory_space=pltpu.MemorySpace.SMEM),   # per-step scalar table
            pl.BlockSpec(memory_space=pltpu.MemorySpace.VMEM),   # initial latent
            pl.BlockSpec(memory_space=pltpu.MemorySpace.VMEM),   # per-step noise (resident)
            pl.BlockSpec(memory_space=pltpu.MemorySpace.VMEM),   # kron(I_B, W) mixing
            pl.BlockSpec(memory_space=pltpu.MemorySpace.VMEM),   # stacked grouping matrices
            pl.BlockSpec(memory_space=pltpu.MemorySpace.VMEM),   # packed per-row constants
        ],
        out_specs=pl.BlockSpec(memory_space=pltpu.MemorySpace.VMEM),
        compiler_params=pltpu.CompilerParams(vmem_limit_bytes=vmem_limit),
    )(coefs, x0, z, w_blk, g_lhs, consts)


# ----------------------------------------------------------------------------------
# Sampler
# ----------------------------------------------------------------------------------
class SamplerDynamicTSNRPallas:
    def __init__(self, unet_params, terminal_scale=0.7):
        self.is_v = True
        self.n_timestep = 1000
        self.guidance_rescale = 0.7
        linear_start = 0.00085
        linear_end = 0.012
        betas = np.linspace(linear_start ** 0.5, linear_end ** 0.5,
                            self.n_timestep, dtype=np.float64) ** 2
        betas = rescale_zero_terminal_snr(betas)
        alphas = 1.0 - betas
        alphas_cumprod = np.cumprod(alphas, axis=0)
        self.alphas_cumprod = alphas_cumprod.astype(np.float32)
        self.sqrt_alphas_cumprod = np.sqrt(alphas_cumprod).astype(np.float32)
        self.sqrt_one_minus_alphas_cumprod = np.sqrt(1.0 - alphas_cumprod).astype(np.float32)
        turning_step = 400
        scale_arr = np.concatenate([np.linspace(1.0, terminal_scale, turning_step),
                                    np.full(self.n_timestep - turning_step, terminal_scale)])
        self.scale_arr = scale_arr.astype(np.float32)
        self.w, self.wct, self.b = unet_params   # synthetic UNet surrogate parameters

    def get_uniform_trailing_steps(self, steps):
        c = self.n_timestep / steps
        ddim_timesteps = np.flip(np.round(np.arange(self.n_timestep, 0, -c))).astype(np.int64)
        return ddim_timesteps - 1

    def forward(self, latent_shape, steps, extra_args, noise_key):
        B, C, H, W = latent_shape
        S = H * W
        BC = B * C
        eta = 1.0
        # TODO(synk): pad S to a multiple of 128 / BC to a multiple of 8 (with masked
        # statistics) for arbitrary latent sizes; current shapes are already aligned.
        assert S % 128 == 0 and BC % 8 == 0, "lane/sublane alignment required"

        timesteps = self.get_uniform_trailing_steps(steps)
        timesteps_prev = np.concatenate([np.zeros(1, dtype=np.int64), timesteps[:-1]])

        alphas = self.alphas_cumprod[timesteps].astype(np.float64)
        alphas_prev = self.alphas_cumprod[timesteps_prev].astype(np.float64)
        scale_arr_t = self.scale_arr[timesteps].astype(np.float64)
        scale_arr_prev = self.scale_arr[timesteps_prev].astype(np.float64)
        sigmas = eta * np.sqrt((1 - alphas_prev) / (1 - alphas) * (1 - alphas / alphas_prev))

        # Per-step scalar coefficient table, in loop-iteration order.
        coefs_np = np.zeros((steps * COEF_STRIDE,), dtype=np.float32)
        for i in range(steps):
            index = steps - 1 - i
            t = int(timesteps[index])
            a_prev = float(alphas_prev[index])
            sigma_t = float(sigmas[index])
            coefs_np[i * COEF_STRIDE:(i + 1) * COEF_STRIDE] = [
                float(self.sqrt_alphas_cumprod[t]),
                float(self.sqrt_one_minus_alphas_cumprod[t]),
                float(scale_arr_prev[index] / scale_arr_t[index]),
                float(np.sqrt(a_prev)),
                # clamp guards a float sqrt round-trip at the zero-terminal-SNR step
                float(np.sqrt(max(1.0 - a_prev - sigma_t ** 2, 0.0))),
                sigma_t,
                0.001 * t,          # timestep term of the surrogate UNet
                0.0,
            ]
        coefs = jnp.asarray(coefs_np)

        cfg_scale = float(extra_args['cfg_scale'])
        pos_ctx = extra_args['positive']['context']   # (B, 1, D)
        neg_ctx = extra_args['negative']['context']

        # Hoisted constant surrogate-UNet biases (context projection + conv bias),
        # with the CFG combine n + cfg*(p - n) folded in (W@x cancels in p - n).
        bias_pos = jnp.einsum('cd,bd->bc', self.wct, pos_ctx[:, 0, :])   # (B, C)
        bias_neg = jnp.einsum('cd,bd->bc', self.wct, neg_ctx[:, 0, :])   # (B, C)
        b_row = self.b[:, 0][None, :]                                    # (1, C)
        bias_p_bc = (bias_pos + b_row).astype(jnp.float32)               # (B, C) std_text source
        bias_o_bc = (b_row + bias_neg + cfg_scale * (bias_pos - bias_neg)
                     ).astype(jnp.float32)                               # (B, C) CFG-combined
        bias_p_flat = bias_p_bc.reshape(BC)
        bias_o_flat = bias_o_bc.reshape(BC)

        # Per-sample constant terms of the grouped sum / sum-of-squares, broadcast
        # back to each channel row and packed into one (BC, 8) constants block.
        def per_sample(col):   # (B,) -> (BC,)
            return jnp.broadcast_to(col[:, None], (B, C)).reshape(BC)

        kp1 = per_sample(S * jnp.sum(bias_p_bc, axis=1))
        kp2 = per_sample(S * jnp.sum(bias_p_bc * bias_p_bc, axis=1))
        ko1 = per_sample(S * jnp.sum(bias_o_bc, axis=1))
        ko2 = per_sample(S * jnp.sum(bias_o_bc * bias_o_bc, axis=1))
        cols = jnp.stack([bias_o_flat, kp1, kp2, ko1, ko2], axis=1)      # (BC, 5)
        consts = jnp.pad(cols, ((0, 0), (0, 8 - cols.shape[1]))).astype(jnp.float32)

        # Block-diagonal conv1x1 mixing and stacked per-sample grouping matrices.
        eye_b = jnp.eye(B, dtype=jnp.float32)
        w_blk = jnp.kron(eye_b, self.w.astype(jnp.float32))              # (BC, BC)
        m_blk = jnp.kron(eye_b, jnp.ones((C, C), dtype=jnp.float32))     # (BC, BC)
        g_lhs = jnp.concatenate([m_blk,
                                 m_blk * bias_p_flat[None, :],
                                 m_blk * bias_o_flat[None, :]], axis=0)  # (3BC, BC)
        g_lhs = g_lhs.astype(jnp.float32)

        # Initial latent and per-step noise (distributionally identical to per-step
        # randn; kept as a table to preserve the jax.random stream).
        k_init, k_loop = jax.random.split(noise_key)
        x0 = jax.random.normal(k_init, (BC, S), dtype=jnp.float32)
        z = jax.random.normal(k_loop, (steps, BC, S), dtype=jnp.float32)

        out = fused_sampler_loop(x0, z, coefs, w_blk, g_lhs, consts,
                                 steps=steps, B=B, C=C,
                                 guidance_rescale=self.guidance_rescale)
        return out.reshape(B, C, H, W)


# ----------------------------------------------------------------------------------
if __name__ == "__main__":
    key = jax.random.PRNGKey(0)
    B, C, H, W = 2, 4, 16, 16
    D = 32
    steps = 5

    k_w, k_wc, k_b, k_pos, k_neg, k_noise = jax.random.split(key, 6)
    # Deterministic synthetic UNet surrogate weights (1x1 conv mixing + context projection).
    w = 0.2 * jax.random.normal(k_w, (C, C), dtype=jnp.float32)
    wct = 0.1 * jax.random.normal(k_wc, (C, D), dtype=jnp.float32)
    b = 0.05 * jax.random.normal(k_b, (C, 1), dtype=jnp.float32)

    pos_ctx = jax.random.normal(k_pos, (B, 1, D), dtype=jnp.float32)
    neg_ctx = jax.random.normal(k_neg, (B, 1, D), dtype=jnp.float32)
    extra_args = {
        'cfg_scale': 7.5,
        'positive': {'context': pos_ctx},
        'negative': {'context': neg_ctx},
    }

    sampler = SamplerDynamicTSNRPallas((w, wct, b), terminal_scale=0.7)
    out = sampler.forward((B, C, H, W), steps, extra_args, k_noise)
    out = jax.block_until_ready(out)

    assert out.shape == (B, C, H, W)
    assert bool(jnp.all(jnp.isfinite(out)))
    print("KERNEL_OK")
</pallas_src>

<mosaic_0001>
module attributes {stable_mosaic.version = 11 : i64} {
  func.func @kernel(%arg0: memref<40xf32, #tpu.memory_space<smem>>, %arg1: memref<8x256xf32, #tpu.memory_space<vmem>>, %arg2: memref<5x8x256xf32, #tpu.memory_space<vmem>>, %arg3: memref<8x8xf32, #tpu.memory_space<vmem>>, %arg4: memref<24x8xf32, #tpu.memory_space<vmem>>, %arg5: memref<8x8xf32, #tpu.memory_space<vmem>>, %arg6: memref<8x256xf32, #tpu.memory_space<vmem>>) attributes {dimension_semantics = [], scalar_prefetch = 0 : i64, scratch_operands = 0 : i64, tpu.core_type = #tpu.core_type<tc>} {
    %c0 = arith.constant 0 : index
    %c0_0 = arith.constant 0 : index
    %0 = vector.load %arg3[%c0, %c0_0] : memref<8x8xf32, #tpu.memory_space<vmem>>, vector<8x8xf32>
    %c0_1 = arith.constant 0 : index
    %c0_2 = arith.constant 0 : index
    %1 = vector.load %arg4[%c0_1, %c0_2] : memref<24x8xf32, #tpu.memory_space<vmem>>, vector<24x8xf32>
    %2 = vector.extract_strided_slice %1 {offsets = [0, 0], sizes = [8, 8], strides = [1, 1]} : vector<24x8xf32> to vector<8x8xf32>
    %c0_3 = arith.constant 0 : index
    %c0_4 = arith.constant 0 : index
    %3 = vector.load %arg5[%c0_3, %c0_4] : memref<8x8xf32, #tpu.memory_space<vmem>>, vector<8x1xf32>
    %c0_5 = arith.constant 0 : index
    %c1 = arith.constant 1 : index
    %4 = vector.load %arg5[%c0_5, %c1] : memref<8x8xf32, #tpu.memory_space<vmem>>, vector<8x1xf32>
    %c0_6 = arith.constant 0 : index
    %c2 = arith.constant 2 : index
    %5 = vector.load %arg5[%c0_6, %c2] : memref<8x8xf32, #tpu.memory_space<vmem>>, vector<8x1xf32>
    %c0_7 = arith.constant 0 : index
    %c3 = arith.constant 3 : index
    %6 = vector.load %arg5[%c0_7, %c3] : memref<8x8xf32, #tpu.memory_space<vmem>>, vector<8x1xf32>
    %c0_8 = arith.constant 0 : index
    %c4 = arith.constant 4 : index
    %7 = vector.load %arg5[%c0_8, %c4] : memref<8x8xf32, #tpu.memory_space<vmem>>, vector<8x1xf32>
    %c0_9 = arith.constant 0 : index
    %c0_10 = arith.constant 0 : index
    %8 = vector.load %arg1[%c0_9, %c0_10] : memref<8x256xf32, #tpu.memory_space<vmem>>, vector<8x256xf32>
    %c0_11 = arith.constant 0 : index
    %9 = memref.load %arg0[%c0_11] : memref<40xf32, #tpu.memory_space<smem>>
    %c1_12 = arith.constant 1 : index
    %10 = memref.load %arg0[%c1_12] : memref<40xf32, #tpu.memory_space<smem>>
    %c2_13 = arith.constant 2 : index
    %11 = memref.load %arg0[%c2_13] : memref<40xf32, #tpu.memory_space<smem>>
    %c3_14 = arith.constant 3 : index
    %12 = memref.load %arg0[%c3_14] : memref<40xf32, #tpu.memory_space<smem>>
    %c4_15 = arith.constant 4 : index
    %13 = memref.load %arg0[%c4_15] : memref<40xf32, #tpu.memory_space<smem>>
    %c5 = arith.constant 5 : index
    %14 = memref.load %arg0[%c5] : memref<40xf32, #tpu.memory_space<smem>>
    %c6 = arith.constant 6 : index
    %15 = memref.load %arg0[%c6] : memref<40xf32, #tpu.memory_space<smem>>
    %cst = arith.constant dense<0.000000e+00> : vector<8x256xf32>
    %16 = tpu.matmul %0, %8, %cst {dimension_numbers = #tpu.dot_dimension_numbers<[1], [0], [0], [1], [0, 0, 1, 1], [], []>} : vector<8x8xf32>, vector<8x256xf32>, vector<8x256xf32> -> vector<8x256xf32>
    %17 = vector.broadcast %15 : f32 to vector<8x256xf32>
    %18 = arith.addf %16, %17 : vector<8x256xf32>
    %cst_16 = arith.constant dense<0.000000e+00> : vector<8xf32>
    %19 = vector.multi_reduction <add>, %18, %cst_16 [1] : vector<8x256xf32> to vector<8xf32>
    %20 = vector.shape_cast %19 : vector<8xf32> to vector<8x1xf32>
    %21 = arith.mulf %18, %18 : vector<8x256xf32>
    %cst_17 = arith.constant dense<0.000000e+00> : vector<8xf32>
    %22 = vector.multi_reduction <add>, %21, %cst_17 [1] : vector<8x256xf32> to vector<8xf32>
    %23 = vector.shape_cast %22 : vector<8xf32> to vector<8x1xf32>
    %cst_18 = arith.constant dense<0.000000e+00> : vector<24x1xf32>
    %24 = tpu.matmul %1, %20, %cst_18 {dimension_numbers = #tpu.dot_dimension_numbers<[1], [0], [0], [1], [0, 0, 1, 1], [], []>} : vector<24x8xf32>, vector<8x1xf32>, vector<24x1xf32> -> vector<24x1xf32>
    %25 = vector.extract_strided_slice %24 {offsets = [0, 0], sizes = [8, 1], strides = [1, 1]} : vector<24x1xf32> to vector<8x1xf32>
    %26 = vector.extract_strided_slice %24 {offsets = [8, 0], sizes = [8, 1], strides = [1, 1]} : vector<24x1xf32> to vector<8x1xf32>
    %27 = vector.extract_strided_slice %24 {offsets = [16, 0], sizes = [8, 1], strides = [1, 1]} : vector<24x1xf32> to vector<8x1xf32>
    %cst_19 = arith.constant dense<0.000000e+00> : vector<8x1xf32>
    %28 = tpu.matmul %2, %23, %cst_19 {dimension_numbers = #tpu.dot_dimension_numbers<[1], [0], [0], [1], [0, 0, 1, 1], [], []>} : vector<8x8xf32>, vector<8x1xf32>, vector<8x1xf32> -> vector<8x1xf32>
    %29 = arith.addf %25, %4 : vector<8x1xf32>
    %cst_20 = arith.constant 2.000000e+00 : f32
    %30 = vector.broadcast %cst_20 : f32 to vector<8x1xf32>
    %31 = arith.mulf %30, %26 : vector<8x1xf32>
    %32 = arith.addf %28, %31 : vector<8x1xf32>
    %33 = arith.addf %32, %5 : vector<8x1xf32>
    %34 = arith.addf %25, %6 : vector<8x1xf32>
    %cst_21 = arith.constant 2.000000e+00 : f32
    %35 = vector.broadcast %cst_21 : f32 to vector<8x1xf32>
    %36 = arith.mulf %35, %27 : vector<8x1xf32>
    %37 = arith.addf %28, %36 : vector<8x1xf32>
    %38 = arith.addf %37, %7 : vector<8x1xf32>
    %39 = arith.mulf %29, %29 : vector<8x1xf32>
    %cst_22 = arith.constant 9.765625E-4 : f32
    %40 = vector.broadcast %cst_22 : f32 to vector<8x1xf32>
    %41 = arith.mulf %39, %40 : vector<8x1xf32>
    %42 = arith.subf %33, %41 : vector<8x1xf32>
    %cst_23 = arith.constant 9.77517105E-4 : f32
    %43 = vector.broadcast %cst_23 : f32 to vector<8x1xf32>
    %44 = arith.mulf %42, %43 : vector<8x1xf32>
    %cst_24 = arith.constant 0.000000e+00 : f32
    %45 = vector.broadcast %cst_24 : f32 to vector<8x1xf32>
    %46 = arith.maximumf %44, %45 : vector<8x1xf32>
    %47 = arith.mulf %34, %34 : vector<8x1xf32>
    %cst_25 = arith.constant 9.765625E-4 : f32
    %48 = vector.broadcast %cst_25 : f32 to vector<8x1xf32>
    %49 = arith.mulf %47, %48 : vector<8x1xf32>
    %50 = arith.subf %38, %49 : vector<8x1xf32>
    %cst_26 = arith.constant 9.77517105E-4 : f32
    %51 = vector.broadcast %cst_26 : f32 to vector<8x1xf32>
    %52 = arith.mulf %50, %51 : vector<8x1xf32>
    %cst_27 = arith.constant 0.000000e+00 : f32
    %53 = vector.broadcast %cst_27 : f32 to vector<8x1xf32>
    %54 = arith.maximumf %52, %53 : vector<8x1xf32>
    %55 = math.sqrt %46 : vector<8x1xf32>
    %56 = math.rsqrt %54 : vector<8x1xf32>
    %57 = arith.mulf %55, %56 : vector<8x1xf32>
    %58 = vector.broadcast %3 : vector<8x1xf32> to vector<8x256xf32>
    %59 = arith.addf %18, %58 : vector<8x256xf32>
    %cst_28 = arith.constant 0.699999988 : f32
    %60 = vector.broadcast %cst_28 : f32 to vector<8x1xf32>
    %61 = arith.mulf %60, %57 : vector<8x1xf32>
    %cst_29 = arith.constant 3.000000e-01 : f32
    %62 = vector.broadcast %cst_29 : f32 to vector<8x1xf32>
    %63 = arith.addf %61, %62 : vector<8x1xf32>
    %64 = vector.broadcast %63 : vector<8x1xf32> to vector<8x256xf32>
    %65 = arith.mulf %59, %64 : vector<8x256xf32>
    %66 = vector.broadcast %9 : f32 to vector<8x256xf32>
    %67 = arith.mulf %66, %65 : vector<8x256xf32>
    %68 = vector.broadcast %10 : f32 to vector<8x256xf32>
    %69 = arith.mulf %68, %8 : vector<8x256xf32>
    %70 = arith.addf %67, %69 : vector<8x256xf32>
    %71 = vector.broadcast %9 : f32 to vector<8x256xf32>
    %72 = arith.mulf %71, %8 : vector<8x256xf32>
    %73 = vector.broadcast %10 : f32 to vector<8x256xf32>
    %74 = arith.mulf %73, %65 : vector<8x256xf32>
    %75 = arith.subf %72, %74 : vector<8x256xf32>
    %76 = vector.broadcast %11 : f32 to vector<8x256xf32>
    %77 = arith.mulf %75, %76 : vector<8x256xf32>
    %78 = vector.broadcast %12 : f32 to vector<8x256xf32>
    %79 = arith.mulf %78, %77 : vector<8x256xf32>
    %80 = vector.broadcast %13 : f32 to vector<8x256xf32>
    %81 = arith.mulf %80, %70 : vector<8x256xf32>
    %82 = arith.addf %79, %81 : vector<8x256xf32>
    %c0_30 = arith.constant 0 : index
    %c0_31 = arith.constant 0 : index
    %c0_32 = arith.constant 0 : index
    %83 = vector.load %arg2[%c0_30, %c0_31, %c0_32] : memref<5x8x256xf32, #tpu.memory_space<vmem>>, vector<1x8x256xf32>
    %84 = vector.shape_cast %83 : vector<1x8x256xf32> to vector<8x256xf32>
    %85 = vector.broadcast %14 : f32 to vector<8x256xf32>
    %86 = arith.mulf %85, %84 : vector<8x256xf32>
    %87 = arith.addf %82, %86 : vector<8x256xf32>
    %c8 = arith.constant 8 : index
    %88 = memref.load %arg0[%c8] : memref<40xf32, #tpu.memory_space<smem>>
    %c9 = arith.constant 9 : index
    %89 = memref.load %arg0[%c9] : memref<40xf32, #tpu.memory_space<smem>>
    %c10 = arith.constant 10 : index
    %90 = memref.load %arg0[%c10] : memref<40xf32, #tpu.memory_space<smem>>
    %c11 = arith.constant 11 : index
    %91 = memref.load %arg0[%c11] : memref<40xf32, #tpu.memory_space<smem>>
    %c12 = arith.constant 12 : index
    %92 = memref.load %arg0[%c12] : memref<40xf32, #tpu.memory_space<smem>>
    %c13 = arith.constant 13 : index
    %93 = memref.load %arg0[%c13] : memref<40xf32, #tpu.memory_space<smem>>
    %c14 = arith.constant 14 : index
    %94 = memref.load %arg0[%c14] : memref<40xf32, #tpu.memory_space<smem>>
    %cst_33 = arith.constant dense<0.000000e+00> : vector<8x256xf32>
    %95 = tpu.matmul %0, %87, %cst_33 {dimension_numbers = #tpu.dot_dimension_numbers<[1], [0], [0], [1], [0, 0, 1, 1], [], []>} : vector<8x8xf32>, vector<8x256xf32>, vector<8x256xf32> -> vector<8x256xf32>
    %96 = vector.broadcast %94 : f32 to vector<8x256xf32>
    %97 = arith.addf %95, %96 : vector<8x256xf32>
    %cst_34 = arith.constant dense<0.000000e+00> : vector<8xf32>
    %98 = vector.multi_reduction <add>, %97, %cst_34 [1] : vector<8x256xf32> to vector<8xf32>
    %99 = vector.shape_cast %98 : vector<8xf32> to vector<8x1xf32>
    %100 = arith.mulf %97, %97 : vector<8x256xf32>
    %cst_35 = arith.constant dense<0.000000e+00> : vector<8xf32>
    %101 = vector.multi_reduction <add>, %100, %cst_35 [1] : vector<8x256xf32> to vector<8xf32>
    %102 = vector.shape_cast %101 : vector<8xf32> to vector<8x1xf32>
    %cst_36 = arith.constant dense<0.000000e+00> : vector<24x1xf32>
    %103 = tpu.matmul %1, %99, %cst_36 {dimension_numbers = #tpu.dot_dimension_numbers<[1], [0], [0], [1], [0, 0, 1, 1], [], []>} : vector<24x8xf32>, vector<8x1xf32>, vector<24x1xf32> -> vector<24x1xf32>
    %104 = vector.extract_strided_slice %103 {offsets = [0, 0], sizes = [8, 1], strides = [1, 1]} : vector<24x1xf32> to vector<8x1xf32>
    %105 = vector.extract_strided_slice %103 {offsets = [8, 0], sizes = [8, 1], strides = [1, 1]} : vector<24x1xf32> to vector<8x1xf32>
    %106 = vector.extract_strided_slice %103 {offsets = [16, 0], sizes = [8, 1], strides = [1, 1]} : vector<24x1xf32> to vector<8x1xf32>
    %cst_37 = arith.constant dense<0.000000e+00> : vector<8x1xf32>
    %107 = tpu.matmul %2, %102, %cst_37 {dimension_numbers = #tpu.dot_dimension_numbers<[1], [0], [0], [1], [0, 0, 1, 1], [], []>} : vector<8x8xf32>, vector<8x1xf32>, vector<8x1xf32> -> vector<8x1xf32>
    %108 = arith.addf %104, %4 : vector<8x1xf32>
    %cst_38 = arith.constant 2.000000e+00 : f32
    %109 = vector.broadcast %cst_38 : f32 to vector<8x1xf32>
    %110 = arith.mulf %109, %105 : vector<8x1xf32>
    %111 = arith.addf %107, %110 : vector<8x1xf32>
    %112 = arith.addf %111, %5 : vector<8x1xf32>
    %113 = arith.addf %104, %6 : vector<8x1xf32>
    %cst_39 = arith.constant 2.000000e+00 : f32
    %114 = vector.broadcast %cst_39 : f32 to vector<8x1xf32>
    %115 = arith.mulf %114, %106 : vector<8x1xf32>
    %116 = arith.addf %107, %115 : vector<8x1xf32>
    %117 = arith.addf %116, %7 : vector<8x1xf32>
    %118 = arith.mulf %108, %108 : vector<8x1xf32>
    %cst_40 = arith.constant 9.765625E-4 : f32
    %119 = vector.broadcast %cst_40 : f32 to vector<8x1xf32>
    %120 = arith.mulf %118, %119 : vector<8x1xf32>
    %121 = arith.subf %112, %120 : vector<8x1xf32>
    %cst_41 = arith.constant 9.77517105E-4 : f32
    %122 = vector.broadcast %cst_41 : f32 to vector<8x1xf32>
    %123 = arith.mulf %121, %122 : vector<8x1xf32>
    %cst_42 = arith.constant 0.000000e+00 : f32
    %124 = vector.broadcast %cst_42 : f32 to vector<8x1xf32>
    %125 = arith.maximumf %123, %124 : vector<8x1xf32>
    %126 = arith.mulf %113, %113 : vector<8x1xf32>
    %cst_43 = arith.constant 9.765625E-4 : f32
    %127 = vector.broadcast %cst_43 : f32 to vector<8x1xf32>
    %128 = arith.mulf %126, %127 : vector<8x1xf32>
    %129 = arith.subf %117, %128 : vector<8x1xf32>
    %cst_44 = arith.constant 9.77517105E-4 : f32
    %130 = vector.broadcast %cst_44 : f32 to vector<8x1xf32>
    %131 = arith.mulf %129, %130 : vector<8x1xf32>
    %cst_45 = arith.constant 0.000000e+00 : f32
    %132 = vector.broadcast %cst_45 : f32 to vector<8x1xf32>
    %133 = arith.maximumf %131, %132 : vector<8x1xf32>
    %134 = math.sqrt %125 : vector<8x1xf32>
    %135 = math.rsqrt %133 : vector<8x1xf32>
    %136 = arith.mulf %134, %135 : vector<8x1xf32>
    %137 = vector.broadcast %3 : vector<8x1xf32> to vector<8x256xf32>
    %138 = arith.addf %97, %137 : vector<8x256xf32>
    %cst_46 = arith.constant 0.699999988 : f32
    %139 = vector.broadcast %cst_46 : f32 to vector<8x1xf32>
    %140 = arith.mulf %139, %136 : vector<8x1xf32>
    %cst_47 = arith.constant 3.000000e-01 : f32
    %141 = vector.broadcast %cst_47 : f32 to vector<8x1xf32>
    %142 = arith.addf %140, %141 : vector<8x1xf32>
    %143 = vector.broadcast %142 : vector<8x1xf32> to vector<8x256xf32>
    %144 = arith.mulf %138, %143 : vector<8x256xf32>
    %145 = vector.broadcast %88 : f32 to vector<8x256xf32>
    %146 = arith.mulf %145, %144 : vector<8x256xf32>
    %147 = vector.broadcast %89 : f32 to vector<8x256xf32>
    %148 = arith.mulf %147, %87 : vector<8x256xf32>
    %149 = arith.addf %146, %148 : vector<8x256xf32>
    %150 = vector.broadcast %88 : f32 to vector<8x256xf32>
    %151 = arith.mulf %150, %87 : vector<8x256xf32>
    %152 = vector.broadcast %89 : f32 to vector<8x256xf32>
    %153 = arith.mulf %152, %144 : vector<8x256xf32>
    %154 = arith.subf %151, %153 : vector<8x256xf32>
    %155 = vector.broadcast %90 : f32 to vector<8x256xf32>
    %156 = arith.mulf %154, %155 : vector<8x256xf32>
    %157 = vector.broadcast %91 : f32 to vector<8x256xf32>
    %158 = arith.mulf %157, %156 : vector<8x256xf32>
    %159 = vector.broadcast %92 : f32 to vector<8x256xf32>
    %160 = arith.mulf %159, %149 : vector<8x256xf32>
    %161 = arith.addf %158, %160 : vector<8x256xf32>
    %c1_48 = arith.constant 1 : index
    %c0_49 = arith.constant 0 : index
    %c0_50 = arith.constant 0 : index
    %162 = vector.load %arg2[%c1_48, %c0_49, %c0_50] : memref<5x8x256xf32, #tpu.memory_space<vmem>>, vector<1x8x256xf32>
    %163 = vector.shape_cast %162 : vector<1x8x256xf32> to vector<8x256xf32>
    %164 = vector.broadcast %93 : f32 to vector<8x256xf32>
    %165 = arith.mulf %164, %163 : vector<8x256xf32>
    %166 = arith.addf %161, %165 : vector<8x256xf32>
    %c16 = arith.constant 16 : index
    %167 = memref.load %arg0[%c16] : memref<40xf32, #tpu.memory_space<smem>>
    %c17 = arith.constant 17 : index
    %168 = memref.load %arg0[%c17] : memref<40xf32, #tpu.memory_space<smem>>
    %c18 = arith.constant 18 : index
    %169 = memref.load %arg0[%c18] : memref<40xf32, #tpu.memory_space<smem>>
    %c19 = arith.constant 19 : index
    %170 = memref.load %arg0[%c19] : memref<40xf32, #tpu.memory_space<smem>>
    %c20 = arith.constant 20 : index
    %171 = memref.load %arg0[%c20] : memref<40xf32, #tpu.memory_space<smem>>
    %c21 = arith.constant 21 : index
    %172 = memref.load %arg0[%c21] : memref<40xf32, #tpu.memory_space<smem>>
    %c22 = arith.constant 22 : index
    %173 = memref.load %arg0[%c22] : memref<40xf32, #tpu.memory_space<smem>>
    %cst_51 = arith.constant dense<0.000000e+00> : vector<8x256xf32>
    %174 = tpu.matmul %0, %166, %cst_51 {dimension_numbers = #tpu.dot_dimension_numbers<[1], [0], [0], [1], [0, 0, 1, 1], [], []>} : vector<8x8xf32>, vector<8x256xf32>, vector<8x256xf32> -> vector<8x256xf32>
    %175 = vector.broadcast %173 : f32 to vector<8x256xf32>
    %176 = arith.addf %174, %175 : vector<8x256xf32>
    %cst_52 = arith.constant dense<0.000000e+00> : vector<8xf32>
    %177 = vector.multi_reduction <add>, %176, %cst_52 [1] : vector<8x256xf32> to vector<8xf32>
    %178 = vector.shape_cast %177 : vector<8xf32> to vector<8x1xf32>
    %179 = arith.mulf %176, %176 : vector<8x256xf32>
    %cst_53 = arith.constant dense<0.000000e+00> : vector<8xf32>
    %180 = vector.multi_reduction <add>, %179, %cst_53 [1] : vector<8x256xf32> to vector<8xf32>
    %181 = vector.shape_cast %180 : vector<8xf32> to vector<8x1xf32>
    %cst_54 = arith.constant dense<0.000000e+00> : vector<24x1xf32>
    %182 = tpu.matmul %1, %178, %cst_54 {dimension_numbers = #tpu.dot_dimension_numbers<[1], [0], [0], [1], [0, 0, 1, 1], [], []>} : vector<24x8xf32>, vector<8x1xf32>, vector<24x1xf32> -> vector<24x1xf32>
    %183 = vector.extract_strided_slice %182 {offsets = [0, 0], sizes = [8, 1], strides = [1, 1]} : vector<24x1xf32> to vector<8x1xf32>
    %184 = vector.extract_strided_slice %182 {offsets = [8, 0], sizes = [8, 1], strides = [1, 1]} : vector<24x1xf32> to vector<8x1xf32>
    %185 = vector.extract_strided_slice %182 {offsets = [16, 0], sizes = [8, 1], strides = [1, 1]} : vector<24x1xf32> to vector<8x1xf32>
    %cst_55 = arith.constant dense<0.000000e+00> : vector<8x1xf32>
    %186 = tpu.matmul %2, %181, %cst_55 {dimension_numbers = #tpu.dot_dimension_numbers<[1], [0], [0], [1], [0, 0, 1, 1], [], []>} : vector<8x8xf32>, vector<8x1xf32>, vector<8x1xf32> -> vector<8x1xf32>
    %187 = arith.addf %183, %4 : vector<8x1xf32>
    %cst_56 = arith.constant 2.000000e+00 : f32
    %188 = vector.broadcast %cst_56 : f32 to vector<8x1xf32>
    %189 = arith.mulf %188, %184 : vector<8x1xf32>
    %190 = arith.addf %186, %189 : vector<8x1xf32>
    %191 = arith.addf %190, %5 : vector<8x1xf32>
    %192 = arith.addf %183, %6 : vector<8x1xf32>
    %cst_57 = arith.constant 2.000000e+00 : f32
    %193 = vector.broadcast %cst_57 : f32 to vector<8x1xf32>
    %194 = arith.mulf %193, %185 : vector<8x1xf32>
    %195 = arith.addf %186, %194 : vector<8x1xf32>
    %196 = arith.addf %195, %7 : vector<8x1xf32>
    %197 = arith.mulf %187, %187 : vector<8x1xf32>
    %cst_58 = arith.constant 9.765625E-4 : f32
    %198 = vector.broadcast %cst_58 : f32 to vector<8x1xf32>
    %199 = arith.mulf %197, %198 : vector<8x1xf32>
    %200 = arith.subf %191, %199 : vector<8x1xf32>
    %cst_59 = arith.constant 9.77517105E-4 : f32
    %201 = vector.broadcast %cst_59 : f32 to vector<8x1xf32>
    %202 = arith.mulf %200, %201 : vector<8x1xf32>
    %cst_60 = arith.constant 0.000000e+00 : f32
    %203 = vector.broadcast %cst_60 : f32 to vector<8x1xf32>
    %204 = arith.maximumf %202, %203 : vector<8x1xf32>
    %205 = arith.mulf %192, %192 : vector<8x1xf32>
    %cst_61 = arith.constant 9.765625E-4 : f32
    %206 = vector.broadcast %cst_61 : f32 to vector<8x1xf32>
    %207 = arith.mulf %205, %206 : vector<8x1xf32>
    %208 = arith.subf %196, %207 : vector<8x1xf32>
    %cst_62 = arith.constant 9.77517105E-4 : f32
    %209 = vector.broadcast %cst_62 : f32 to vector<8x1xf32>
    %210 = arith.mulf %208, %209 : vector<8x1xf32>
    %cst_63 = arith.constant 0.000000e+00 : f32
    %211 = vector.broadcast %cst_63 : f32 to vector<8x1xf32>
    %212 = arith.maximumf %210, %211 : vector<8x1xf32>
    %213 = math.sqrt %204 : vector<8x1xf32>
    %214 = math.rsqrt %212 : vector<8x1xf32>
    %215 = arith.mulf %213, %214 : vector<8x1xf32>
    %216 = vector.broadcast %3 : vector<8x1xf32> to vector<8x256xf32>
    %217 = arith.addf %176, %216 : vector<8x256xf32>
    %cst_64 = arith.constant 0.699999988 : f32
    %218 = vector.broadcast %cst_64 : f32 to vector<8x1xf32>
    %219 = arith.mulf %218, %215 : vector<8x1xf32>
    %cst_65 = arith.constant 3.000000e-01 : f32
    %220 = vector.broadcast %cst_65 : f32 to vector<8x1xf32>
    %221 = arith.addf %219, %220 : vector<8x1xf32>
    %222 = vector.broadcast %221 : vector<8x1xf32> to vector<8x256xf32>
    %223 = arith.mulf %217, %222 : vector<8x256xf32>
    %224 = vector.broadcast %167 : f32 to vector<8x256xf32>
    %225 = arith.mulf %224, %223 : vector<8x256xf32>
    %226 = vector.broadcast %168 : f32 to vector<8x256xf32>
    %227 = arith.mulf %226, %166 : vector<8x256xf32>
    %228 = arith.addf %225, %227 : vector<8x256xf32>
    %229 = vector.broadcast %167 : f32 to vector<8x256xf32>
    %230 = arith.mulf %229, %166 : vector<8x256xf32>
    %231 = vector.broadcast %168 : f32 to vector<8x256xf32>
    %232 = arith.mulf %231, %223 : vector<8x256xf32>
    %233 = arith.subf %230, %232 : vector<8x256xf32>
    %234 = vector.broadcast %169 : f32 to vector<8x256xf32>
    %235 = arith.mulf %233, %234 : vector<8x256xf32>
    %236 = vector.broadcast %170 : f32 to vector<8x256xf32>
    %237 = arith.mulf %236, %235 : vector<8x256xf32>
    %238 = vector.broadcast %171 : f32 to vector<8x256xf32>
    %239 = arith.mulf %238, %228 : vector<8x256xf32>
    %240 = arith.addf %237, %239 : vector<8x256xf32>
    %c2_66 = arith.constant 2 : index
    %c0_67 = arith.constant 0 : index
    %c0_68 = arith.constant 0 : index
    %241 = vector.load %arg2[%c2_66, %c0_67, %c0_68] : memref<5x8x256xf32, #tpu.memory_space<vmem>>, vector<1x8x256xf32>
    %242 = vector.shape_cast %241 : vector<1x8x256xf32> to vector<8x256xf32>
    %243 = vector.broadcast %172 : f32 to vector<8x256xf32>
    %244 = arith.mulf %243, %242 : vector<8x256xf32>
    %245 = arith.addf %240, %244 : vector<8x256xf32>
    %c24 = arith.constant 24 : index
    %246 = memref.load %arg0[%c24] : memref<40xf32, #tpu.memory_space<smem>>
    %c25 = arith.constant 25 : index
    %247 = memref.load %arg0[%c25] : memref<40xf32, #tpu.memory_space<smem>>
    %c26 = arith.constant 26 : index
    %248 = memref.load %arg0[%c26] : memref<40xf32, #tpu.memory_space<smem>>
    %c27 = arith.constant 27 : index
    %249 = memref.load %arg0[%c27] : memref<40xf32, #tpu.memory_space<smem>>
    %c28 = arith.constant 28 : index
    %250 = memref.load %arg0[%c28] : memref<40xf32, #tpu.memory_space<smem>>
    %c29 = arith.constant 29 : index
    %251 = memref.load %arg0[%c29] : memref<40xf32, #tpu.memory_space<smem>>
    %c30 = arith.constant 30 : index
    %252 = memref.load %arg0[%c30] : memref<40xf32, #tpu.memory_space<smem>>
    %cst_69 = arith.constant dense<0.000000e+00> : vector<8x256xf32>
    %253 = tpu.matmul %0, %245, %cst_69 {dimension_numbers = #tpu.dot_dimension_numbers<[1], [0], [0], [1], [0, 0, 1, 1], [], []>} : vector<8x8xf32>, vector<8x256xf32>, vector<8x256xf32> -> vector<8x256xf32>
    %254 = vector.broadcast %252 : f32 to vector<8x256xf32>
    %255 = arith.addf %253, %254 : vector<8x256xf32>
    %cst_70 = arith.constant dense<0.000000e+00> : vector<8xf32>
    %256 = vector.multi_reduction <add>, %255, %cst_70 [1] : vector<8x256xf32> to vector<8xf32>
    %257 = vector.shape_cast %256 : vector<8xf32> to vector<8x1xf32>
    %258 = arith.mulf %255, %255 : vector<8x256xf32>
    %cst_71 = arith.constant dense<0.000000e+00> : vector<8xf32>
    %259 = vector.multi_reduction <add>, %258, %cst_71 [1] : vector<8x256xf32> to vector<8xf32>
    %260 = vector.shape_cast %259 : vector<8xf32> to vector<8x1xf32>
    %cst_72 = arith.constant dense<0.000000e+00> : vector<24x1xf32>
    %261 = tpu.matmul %1, %257, %cst_72 {dimension_numbers = #tpu.dot_dimension_numbers<[1], [0], [0], [1], [0, 0, 1, 1], [], []>} : vector<24x8xf32>, vector<8x1xf32>, vector<24x1xf32> -> vector<24x1xf32>
    %262 = vector.extract_strided_slice %261 {offsets = [0, 0], sizes = [8, 1], strides = [1, 1]} : vector<24x1xf32> to vector<8x1xf32>
    %263 = vector.extract_strided_slice %261 {offsets = [8, 0], sizes = [8, 1], strides = [1, 1]} : vector<24x1xf32> to vector<8x1xf32>
    %264 = vector.extract_strided_slice %261 {offsets = [16, 0], sizes = [8, 1], strides = [1, 1]} : vector<24x1xf32> to vector<8x1xf32>
    %cst_73 = arith.constant dense<0.000000e+00> : vector<8x1xf32>
    %265 = tpu.matmul %2, %260, %cst_73 {dimension_numbers = #tpu.dot_dimension_numbers<[1], [0], [0], [1], [0, 0, 1, 1], [], []>} : vector<8x8xf32>, vector<8x1xf32>, vector<8x1xf32> -> vector<8x1xf32>
    %266 = arith.addf %262, %4 : vector<8x1xf32>
    %cst_74 = arith.constant 2.000000e+00 : f32
    %267 = vector.broadcast %cst_74 : f32 to vector<8x1xf32>
    %268 = arith.mulf %267, %263 : vector<8x1xf32>
    %269 = arith.addf %265, %268 : vector<8x1xf32>
    %270 = arith.addf %269, %5 : vector<8x1xf32>
    %271 = arith.addf %262, %6 : vector<8x1xf32>
    %cst_75 = arith.constant 2.000000e+00 : f32
    %272 = vector.broadcast %cst_75 : f32 to vector<8x1xf32>
    %273 = arith.mulf %272, %264 : vector<8x1xf32>
    %274 = arith.addf %265, %273 : vector<8x1xf32>
    %275 = arith.addf %274, %7 : vector<8x1xf32>
    %276 = arith.mulf %266, %266 : vector<8x1xf32>
    %cst_76 = arith.constant 9.765625E-4 : f32
    %277 = vector.broadcast %cst_76 : f32 to vector<8x1xf32>
    %278 = arith.mulf %276, %277 : vector<8x1xf32>
    %279 = arith.subf %270, %278 : vector<8x1xf32>
    %cst_77 = arith.constant 9.77517105E-4 : f32
    %280 = vector.broadcast %cst_77 : f32 to vector<8x1xf32>
    %281 = arith.mulf %279, %280 : vector<8x1xf32>
    %cst_78 = arith.constant 0.000000e+00 : f32
    %282 = vector.broadcast %cst_78 : f32 to vector<8x1xf32>
    %283 = arith.maximumf %281, %282 : vector<8x1xf32>
    %284 = arith.mulf %271, %271 : vector<8x1xf32>
    %cst_79 = arith.constant 9.765625E-4 : f32
    %285 = vector.broadcast %cst_79 : f32 to vector<8x1xf32>
    %286 = arith.mulf %284, %285 : vector<8x1xf32>
    %287 = arith.subf %275, %286 : vector<8x1xf32>
    %cst_80 = arith.constant 9.77517105E-4 : f32
    %288 = vector.broadcast %cst_80 : f32 to vector<8x1xf32>
    %289 = arith.mulf %287, %288 : vector<8x1xf32>
    %cst_81 = arith.constant 0.000000e+00 : f32
    %290 = vector.broadcast %cst_81 : f32 to vector<8x1xf32>
    %291 = arith.maximumf %289, %290 : vector<8x1xf32>
    %292 = math.sqrt %283 : vector<8x1xf32>
    %293 = math.rsqrt %291 : vector<8x1xf32>
    %294 = arith.mulf %292, %293 : vector<8x1xf32>
    %295 = vector.broadcast %3 : vector<8x1xf32> to vector<8x256xf32>
    %296 = arith.addf %255, %295 : vector<8x256xf32>
    %cst_82 = arith.constant 0.699999988 : f32
    %297 = vector.broadcast %cst_82 : f32 to vector<8x1xf32>
    %298 = arith.mulf %297, %294 : vector<8x1xf32>
    %cst_83 = arith.constant 3.000000e-01 : f32
    %299 = vector.broadcast %cst_83 : f32 to vector<8x1xf32>
    %300 = arith.addf %298, %299 : vector<8x1xf32>
    %301 = vector.broadcast %300 : vector<8x1xf32> to vector<8x256xf32>
    %302 = arith.mulf %296, %301 : vector<8x256xf32>
    %303 = vector.broadcast %246 : f32 to vector<8x256xf32>
    %304 = arith.mulf %303, %302 : vector<8x256xf32>
    %305 = vector.broadcast %247 : f32 to vector<8x256xf32>
    %306 = arith.mulf %305, %245 : vector<8x256xf32>
    %307 = arith.addf %304, %306 : vector<8x256xf32>
    %308 = vector.broadcast %246 : f32 to vector<8x256xf32>
    %309 = arith.mulf %308, %245 : vector<8x256xf32>
    %310 = vector.broadcast %247 : f32 to vector<8x256xf32>
    %311 = arith.mulf %310, %302 : vector<8x256xf32>
    %312 = arith.subf %309, %311 : vector<8x256xf32>
    %313 = vector.broadcast %248 : f32 to vector<8x256xf32>
    %314 = arith.mulf %312, %313 : vector<8x256xf32>
    %315 = vector.broadcast %249 : f32 to vector<8x256xf32>
    %316 = arith.mulf %315, %314 : vector<8x256xf32>
    %317 = vector.broadcast %250 : f32 to vector<8x256xf32>
    %318 = arith.mulf %317, %307 : vector<8x256xf32>
    %319 = arith.addf %316, %318 : vector<8x256xf32>
    %c3_84 = arith.constant 3 : index
    %c0_85 = arith.constant 0 : index
    %c0_86 = arith.constant 0 : index
    %320 = vector.load %arg2[%c3_84, %c0_85, %c0_86] : memref<5x8x256xf32, #tpu.memory_space<vmem>>, vector<1x8x256xf32>
    %321 = vector.shape_cast %320 : vector<1x8x256xf32> to vector<8x256xf32>
    %322 = vector.broadcast %251 : f32 to vector<8x256xf32>
    %323 = arith.mulf %322, %321 : vector<8x256xf32>
    %324 = arith.addf %319, %323 : vector<8x256xf32>
    %c32 = arith.constant 32 : index
    %325 = memref.load %arg0[%c32] : memref<40xf32, #tpu.memory_space<smem>>
    %c33 = arith.constant 33 : index
    %326 = memref.load %arg0[%c33] : memref<40xf32, #tpu.memory_space<smem>>
    %c34 = arith.constant 34 : index
    %327 = memref.load %arg0[%c34] : memref<40xf32, #tpu.memory_space<smem>>
    %c35 = arith.constant 35 : index
    %328 = memref.load %arg0[%c35] : memref<40xf32, #tpu.memory_space<smem>>
    %c36 = arith.constant 36 : index
    %329 = memref.load %arg0[%c36] : memref<40xf32, #tpu.memory_space<smem>>
    %c37 = arith.constant 37 : index
    %330 = memref.load %arg0[%c37] : memref<40xf32, #tpu.memory_space<smem>>
    %c38 = arith.constant 38 : index
    %331 = memref.load %arg0[%c38] : memref<40xf32, #tpu.memory_space<smem>>
    %cst_87 = arith.constant dense<0.000000e+00> : vector<8x256xf32>
    %332 = tpu.matmul %0, %324, %cst_87 {dimension_numbers = #tpu.dot_dimension_numbers<[1], [0], [0], [1], [0, 0, 1, 1], [], []>} : vector<8x8xf32>, vector<8x256xf32>, vector<8x256xf32> -> vector<8x256xf32>
    %333 = vector.broadcast %331 : f32 to vector<8x256xf32>
    %334 = arith.addf %332, %333 : vector<8x256xf32>
    %cst_88 = arith.constant dense<0.000000e+00> : vector<8xf32>
    %335 = vector.multi_reduction <add>, %334, %cst_88 [1] : vector<8x256xf32> to vector<8xf32>
    %336 = vector.shape_cast %335 : vector<8xf32> to vector<8x1xf32>
    %337 = arith.mulf %334, %334 : vector<8x256xf32>
    %cst_89 = arith.constant dense<0.000000e+00> : vector<8xf32>
    %338 = vector.multi_reduction <add>, %337, %cst_89 [1] : vector<8x256xf32> to vector<8xf32>
    %339 = vector.shape_cast %338 : vector<8xf32> to vector<8x1xf32>
    %cst_90 = arith.constant dense<0.000000e+00> : vector<24x1xf32>
    %340 = tpu.matmul %1, %336, %cst_90 {dimension_numbers = #tpu.dot_dimension_numbers<[1], [0], [0], [1], [0, 0, 1, 1], [], []>} : vector<24x8xf32>, vector<8x1xf32>, vector<24x1xf32> -> vector<24x1xf32>
    %341 = vector.extract_strided_slice %340 {offsets = [0, 0], sizes = [8, 1], strides = [1, 1]} : vector<24x1xf32> to vector<8x1xf32>
    %342 = vector.extract_strided_slice %340 {offsets = [8, 0], sizes = [8, 1], strides = [1, 1]} : vector<24x1xf32> to vector<8x1xf32>
    %343 = vector.extract_strided_slice %340 {offsets = [16, 0], sizes = [8, 1], strides = [1, 1]} : vector<24x1xf32> to vector<8x1xf32>
    %cst_91 = arith.constant dense<0.000000e+00> : vector<8x1xf32>
    %344 = tpu.matmul %2, %339, %cst_91 {dimension_numbers = #tpu.dot_dimension_numbers<[1], [0], [0], [1], [0, 0, 1, 1], [], []>} : vector<8x8xf32>, vector<8x1xf32>, vector<8x1xf32> -> vector<8x1xf32>
    %345 = arith.addf %341, %4 : vector<8x1xf32>
    %cst_92 = arith.constant 2.000000e+00 : f32
    %346 = vector.broadcast %cst_92 : f32 to vector<8x1xf32>
    %347 = arith.mulf %346, %342 : vector<8x1xf32>
    %348 = arith.addf %344, %347 : vector<8x1xf32>
    %349 = arith.addf %348, %5 : vector<8x1xf32>
    %350 = arith.addf %341, %6 : vector<8x1xf32>
    %cst_93 = arith.constant 2.000000e+00 : f32
    %351 = vector.broadcast %cst_93 : f32 to vector<8x1xf32>
    %352 = arith.mulf %351, %343 : vector<8x1xf32>
    %353 = arith.addf %344, %352 : vector<8x1xf32>
    %354 = arith.addf %353, %7 : vector<8x1xf32>
    %355 = arith.mulf %345, %345 : vector<8x1xf32>
    %cst_94 = arith.constant 9.765625E-4 : f32
    %356 = vector.broadcast %cst_94 : f32 to vector<8x1xf32>
    %357 = arith.mulf %355, %356 : vector<8x1xf32>
    %358 = arith.subf %349, %357 : vector<8x1xf32>
    %cst_95 = arith.constant 9.77517105E-4 : f32
    %359 = vector.broadcast %cst_95 : f32 to vector<8x1xf32>
    %360 = arith.mulf %358, %359 : vector<8x1xf32>
    %cst_96 = arith.constant 0.000000e+00 : f32
    %361 = vector.broadcast %cst_96 : f32 to vector<8x1xf32>
    %362 = arith.maximumf %360, %361 : vector<8x1xf32>
    %363 = arith.mulf %350, %350 : vector<8x1xf32>
    %cst_97 = arith.constant 9.765625E-4 : f32
    %364 = vector.broadcast %cst_97 : f32 to vector<8x1xf32>
    %365 = arith.mulf %363, %364 : vector<8x1xf32>
    %366 = arith.subf %354, %365 : vector<8x1xf32>
    %cst_98 = arith.constant 9.77517105E-4 : f32
    %367 = vector.broadcast %cst_98 : f32 to vector<8x1xf32>
    %368 = arith.mulf %366, %367 : vector<8x1xf32>
    %cst_99 = arith.constant 0.000000e+00 : f32
    %369 = vector.broadcast %cst_99 : f32 to vector<8x1xf32>
    %370 = arith.maximumf %368, %369 : vector<8x1xf32>
    %371 = math.sqrt %362 : vector<8x1xf32>
    %372 = math.rsqrt %370 : vector<8x1xf32>
    %373 = arith.mulf %371, %372 : vector<8x1xf32>
    %374 = vector.broadcast %3 : vector<8x1xf32> to vector<8x256xf32>
    %375 = arith.addf %334, %374 : vector<8x256xf32>
    %cst_100 = arith.constant 0.699999988 : f32
    %376 = vector.broadcast %cst_100 : f32 to vector<8x1xf32>
    %377 = arith.mulf %376, %373 : vector<8x1xf32>
    %cst_101 = arith.constant 3.000000e-01 : f32
    %378 = vector.broadcast %cst_101 : f32 to vector<8x1xf32>
    %379 = arith.addf %377, %378 : vector<8x1xf32>
    %380 = vector.broadcast %379 : vector<8x1xf32> to vector<8x256xf32>
    %381 = arith.mulf %375, %380 : vector<8x256xf32>
    %382 = vector.broadcast %325 : f32 to vector<8x256xf32>
    %383 = arith.mulf %382, %381 : vector<8x256xf32>
    %384 = vector.broadcast %326 : f32 to vector<8x256xf32>
    %385 = arith.mulf %384, %324 : vector<8x256xf32>
    %386 = arith.addf %383, %385 : vector<8x256xf32>
    %387 = vector.broadcast %325 : f32 to vector<8x256xf32>
    %388 = arith.mulf %387, %324 : vector<8x256xf32>
    %389 = vector.broadcast %326 : f32 to vector<8x256xf32>
    %390 = arith.mulf %389, %381 : vector<8x256xf32>
    %391 = arith.subf %388, %390 : vector<8x256xf32>
    %392 = vector.broadcast %327 : f32 to vector<8x256xf32>
    %393 = arith.mulf %391, %392 : vector<8x256xf32>
    %394 = vector.broadcast %328 : f32 to vector<8x256xf32>
    %395 = arith.mulf %394, %393 : vector<8x256xf32>
    %396 = vector.broadcast %329 : f32 to vector<8x256xf32>
    %397 = arith.mulf %396, %386 : vector<8x256xf32>
    %398 = arith.addf %395, %397 : vector<8x256xf32>
    %c4_102 = arith.constant 4 : index
    %c0_103 = arith.constant 0 : index
    %c0_104 = arith.constant 0 : index
    %399 = vector.load %arg2[%c4_102, %c0_103, %c0_104] : memref<5x8x256xf32, #tpu.memory_space<vmem>>, vector<1x8x256xf32>
    %400 = vector.shape_cast %399 : vector<1x8x256xf32> to vector<8x256xf32>
    %401 = vector.broadcast %330 : f32 to vector<8x256xf32>
    %402 = arith.mulf %401, %400 : vector<8x256xf32>
    %403 = arith.addf %398, %402 : vector<8x256xf32>
    %c0_105 = arith.constant 0 : index
    %c0_106 = arith.constant 0 : index
    %404 = vector.load %arg6[%c0_105, %c0_106] : memref<8x256xf32, #tpu.memory_space<vmem>>, vector<8x256xf32>
    tpu.vector_store %arg6[%c0_105, %c0_106], %403 {strides = array<i32>} : memref<8x256xf32, #tpu.memory_space<vmem>>, vector<8x256xf32>,
    return
  }
}

</mosaic_0001>

<bundles_post_ra>
// kernel: tpu_custom_call.1
= control target key start
LH: loop header
LB: loop body
LE: loop exit
PB: predicated region body
PF: predicated region fallthrough
CT: control target
= control target key end

     0   :  { %11 = vsyncpa [#allocation5], 0  ;;  %s1545_s0 = inlined_call_operand.hbm [shape: f32[40], index: 0, kind: input, shape index: {}]   ;;  %s1546_s1 = inlined_call_operand.vmem [shape: f32[8,256], index: 1, kind: input, shape index: {}]   ;;  %s1547_s2 = inlined_call_operand.hbm [shape: f32[5,8,256], index: 2, kind: input, shape index: {}]   ;;  %s1548_s3 = inlined_call_operand.vmem [shape: f32[8,8], index: 3, kind: input, shape index: {}]   ;;  %s1549_s4 = inlined_call_operand.vmem [shape: f32[24,8], index: 4, kind: input, shape index: {}]   ;;  %s1550_s5 = inlined_call_operand.vmem [shape: f32[8,8], index: 5, kind: input, shape index: {}]   ;;  %s1551_s6 = inlined_call_operand.hbm [shape: f32[8,256], index: 6, kind: output, shape index: {}]  }
   0x1   :  { %12 = vsyncpa [#allocation3], 0 }
   0x2   :  { %13 = vsyncpa [#allocation4], 0  ;;  %s19_s23 = sshll.u32 %s1545_s0, 4  ;;  %s29_s26 = sshll.u32 %s1547_s2, 4  ;;  %s20_s23 = int_to_ptr.hbm [resolvable:$true] %s19_s23  ;;  %s30_s26 = int_to_ptr.hbm [resolvable:$true] %s29_s26 }
   0x3   :  { %s1207_s27 = smov [#allocation2]   ;;  %s1208_s28 = smov [#allocation6]  }
   0x4   :  { %22 = dma.hbm_to_smem %s20_s23, 16, %s1207_s27, [#allocation5]  }
   0x5   :  { %s31_s29 = sshll.u32 %s1208_s28, 4  ;;  %s1209_s30 = smov 256   ;;  %s32_s29 = int_to_ptr.vmem [resolvable:$true] %s31_s29 }
   0x6   :  { %s1210_s7 = smov 16  }
   0x7   :  { %37 = dma.hbm_to_vmem [thread:$0]  %s30_s26, 1280, %s32_s29, [#allocation3], %s1209_s30, %s1209_s30, %s1210_s7  }
   0x8   :  { %1201 = dma.done.wait [#allocation5], 16  }
   0x9   :  { %1202 = vsyncadd [#allocation5], 4294967280 }
   0xa   :  { %1203 = dma.done.wait [#allocation3], 1280  }
   0xb   :  { %1204 = vsyncadd [#allocation3], 4294966016 }
   0xc   :  { %52 = sfence }
   0xd   :  { %v1261_v0 = vld [vmem:[%s1546_s1] sm:$0xff]  ;;  %vm68_vm0 = vcmask 64512   ;;  %v1271_v2 = vld [vmem:[%s1546_s1 + $0x8] sm:$0xff]  ;;  %v1211_v3 = vmov 0   ;;  %s1212_s13 = smov 127   ;;  %s1213_s14 = smov 125  }
   0xe   :  { %v1266_v1 = vld [vmem:[%s1548_s3] sm:$0xff]  ;;  %87 = vmatpush.msra.mxu0 %v1261_v0  ;;  %1118 = vset.pattern.permute.xlu0 %v1211_v3  ;;  %s1049_s3 = sld [smem:[#allocation2 + $0x6]]  ;;  %s1214_s15 = smov 126   ;;  %v1302_v16 = vld [vmem:[%s1549_s4 + $0x8] sm:$0xff]  ;;  %v1311_v18 = vld [vmem:[%s1549_s4 + $0x10] sm:$0xff] }
   0xf   :  { %1050 = vmatmul.msk.f32.vlgmr.msra.gmra.mxu0 %vm68_vm0, %v1266_v1  ;;  %1119 = vset.pattern.permute.xlu1 %v1211_v3  ;;  %v57_v9 = vld [vmem:[%s1550_s5] sm:$0xff]  ;;  %s1215_s16 = smov 124   ;;  %s1044_s22 = sld [smem:[#allocation2 + $0x1]] }
  0x10   :  { %107 = vmatpush.msrb.mxu0 %v1271_v2  ;;  %1120 = vset.pattern.permute.xlu2 %v1211_v3  ;;  %v1295_v14 = vld [vmem:[%s1549_s4] sm:$0xff]  ;;  %s60_s4 = sld [smem:[#allocation2]] }
  0x11   :  { %176 = vrot.lane.b32.xlu1 %v57_v9, %s1212_s13  ;;  %182 = vrot.lane.b32.xlu2 %v57_v9, %s1214_s15  ;;  %s1327_s23 = sld [smem:[#allocation2 + $0x2]] }
  0x12   :  { %s1331_s24 = sld [smem:[#allocation2 + $0x5]] }
  0x13   :  { %s1333_s25 = sld [smem:[#allocation2 + $0x3]] }
  0x14   :  { %v67_v5 = vstv %s1049_s3  ;;  %s1047_s26 = sld [smem:[#allocation2 + $0x4]] }
  0x15   :  { %s1062_s27 = sld [smem:[#allocation2 + $0xe]] }
  0x16   :  { %s1056_s28 = sld [smem:[#allocation2 + $0x8]] }
  0x17   :  { %1051 = vmatmul.msk.f32.vlgmr.msrb.gmra.mxu0 %vm68_vm0, %v1266_v1  ;;  %s1057_s29 = sld [smem:[#allocation2 + $0x9]] }
  0x18   :  { %s1058_s30 = sld [smem:[#allocation2 + $0xa]] }
  0x19   :  { %186 = vrot.lane.b32.xlu1 %v57_v9, %s1213_s14  ;;  %192 = vrot.lane.b32.xlu2 %v57_v9, %s1215_s16  ;;  %s1378_s7 = sld [smem:[#allocation2 + $0xd]] }
  0x1a   :  { %s1380_s0 = sld [smem:[#allocation2 + $0xc]] }
  0x1b   :  { %s1382_s8 = sld [smem:[#allocation2 + $0xb]] }
  0x1c   :  { %s1075_s2 = sld [smem:[#allocation2 + $0x16]] }
  0x1d   :  { %s1069_s9 = sld [smem:[#allocation2 + $0x10]] }
  0x1e   :  { %s1070_s10 = sld [smem:[#allocation2 + $0x11]] }
  0x1f   :  { %s1071_s11 = sld [smem:[#allocation2 + $0x12]] }
  0x20   :  { %s1427_s3 = sld [smem:[#allocation2 + $0x15]] }
  0x21   :  { %s1429_s1 = sld [smem:[#allocation2 + $0x13]] }
  0x22   :  { %s1431_s12 = sld [smem:[#allocation2 + $0x14]] }
  0x23   :  { %s1088_s13 = sld [smem:[#allocation2 + $0x1e]] }
  0x24   :  { %s1082_s14 = sld [smem:[#allocation2 + $0x18]] }
  0x25   :  { %s1083_s15 = sld [smem:[#allocation2 + $0x19]] }
  0x26   :  { %s1084_s16 = sld [smem:[#allocation2 + $0x1a]] }
  0x27   :  { %s1476_s5 = sld [smem:[#allocation2 + $0x1d]] }
  0x28   :  { %s1478_s17 = sld [smem:[#allocation2 + $0x1b]] }
  0x29   :  { %s1480_s18 = sld [smem:[#allocation2 + $0x1c]] }
  0x2a   :  { %s1101_s19 = sld [smem:[#allocation2 + $0x26]] }
  0x2b   :  { %s1095_s20 = sld [smem:[#allocation2 + $0x20]] }
  0x2c   :  { %s1096_s21 = sld [smem:[#allocation2 + $0x21]] }
  0x6b   :  { %v1318_v22 = vpop.permute.xlu2 %182 }
  0x73   :  { %v1324_v37 = vpop.permute.xlu2 %192 }
  0x83   :  { %v1315_v19 = vpop.permute.xlu1 %176 }
  0x8b   :  { %v1320_v27 = vpop.permute.xlu1 %186 }
  0x8c   :  { %v89_v4 = vpop.f32.mrf.mxu0 }
  0x8d   :  { %v1279_v7 = vadd.f32 %v89_v4, %v67_v5 }
  0x8f   :  { %v115_v12 = vmul.f32 %v1279_v7, %v1279_v7 }
  0x94   :  { %v109_v6 = vpop.f32.mrf.mxu0 }
  0x95   :  { %v1281_v8 = vadd.f32 %v109_v6, %v67_v5  ;;  %v244_v5 = vstv %s60_s4  ;;  %v247_v6 = vstv %s1044_s22  ;;  %s1097_s4 = sld [smem:[#allocation2 + $0x22]] }
  0x96   :  { %s1525_s22 = sld [smem:[#allocation2 + $0x25]] }
  0x97   :  { %v112_v10 = vadd.f32 %v1281_v8, %v1279_v7  ;;  %v116_v11 = vmul.f32 %v1281_v8, %v1281_v8 }
  0x99   :  { %113 = vadd.xlane.f32.xlu0 %v112_v10  ;;  %v117_v13 = vadd.f32 %v116_v11, %v115_v12  ;;  %v252_v11 = vmul.f32 %v244_v5, %v1261_v0  ;;  %v253_v12 = vmul.f32 %v244_v5, %v1271_v2 }
  0xa1   :  { %118 = vadd.xlane.f32.xlu0 %v117_v13 }
  0xb5   :  { %230 = vperm.xlu0 %1118, %v57_v9  }
 0x10c   :  { %v114_v15 = vpop.xlane.xlu0 %113 }
 0x10d   :  { %144 = vmatpush.msra.mxu2 %v114_v15  ;;  %v248_v15 = vmul.f32 %v247_v6, %v1261_v0 }
 0x10e   :  { %1052 = vmatmul.msk.f32.vlgmr.msra.gmra.mxu2 %vm68_vm0, %v1295_v14 }
 0x114   :  { %v119_v17 = vpop.xlane.xlu0 %118 }
 0x115   :  { %170 = vmatpush.msra.mxu3 %v119_v17  ;;  %v249_v17 = vmul.f32 %v247_v6, %v1271_v2 }
 0x116   :  { %1053 = vmatmul.msk.f32.gmra.mxu2 %vm68_vm0, %v1302_v16  ;;  %1055 = vmatmul.msk.f32.vlgmr.msra.gmra.mxu3 %vm68_vm0, %v1295_v14 }
 0x11e   :  { %1054 = vmatmul.msk.f32.gmra.mxu2 %vm68_vm0, %v1311_v18 }
 0x127   :  { %v1329_v4 = vpop.permute.xlu0 %230 }
 0x128   :  { %v233_v9 = vadd.f32 %v1329_v4, %v1279_v7  ;;  %v234_v10 = vadd.f32 %v1329_v4, %v1281_v8  ;;  %v258_v7 = vstv %s1327_s23  ;;  %s1527_s23 = sld [smem:[#allocation2 + $0x24]] }
 0x191   :  { %v146_v20 = vpop.f32.mrf.mxu2 }
 0x192   :  { %v179_v21 = vadd.f32 %v1315_v19, %v146_v20  ;;  %v189_v29 = vadd.f32 %v1320_v27, %v146_v20 }
 0x194   :  { %v196_v25 = vmul.f32 %v179_v21, %v179_v21  ;;  %v201_v34 = vmul.f32 %v189_v29, %v189_v29 }
 0x196   :  { %v197_v30 = vmul.f32 0.0009765625, %v196_v25  ;;  %v202_v40 = vmul.f32 0.0009765625, %v201_v34  ;;  %v261_v34 = vstv %s1333_s25  ;;  %s1216_s25 = smov [#allocation7]  }
 0x199   :  { %v149_v23 = vpop.f32.mrf.mxu2  ;;  %v172_v24 = vpop.f32.mrf.mxu3 }
 0x19a   :  { %v180_v26 = vmul.f32 2.0, %v149_v23 }
 0x19c   :  { %v181_v28 = vadd.f32 %v180_v26, %v172_v24 }
 0x19e   :  { %v185_v31 = vadd.f32 %v1318_v22, %v181_v28  ;;  %v271_v28 = vstv %s1331_s24  ;;  %s1529_s24 = sld [smem:[#allocation2 + $0x23]] }
 0x1a0   :  { %v198_v32 = vsub.f32 %v185_v31, %v197_v30 }
 0x1a1   :  { %v152_v33 = vpop.f32.mrf.mxu2 }
 0x1a2   :  { %v199_v35 = vmul.f32 0.0009775171, %v198_v32  ;;  %v190_v36 = vmul.f32 2.0, %v152_v33  ;;  %v269_v32 = vld [vmem:[#allocation6] sm:$0xff]  ;;  %v270_v33 = vld [vmem:[#allocation6 + $0x8] sm:$0xff] }
 0x1a3   :  { %v273_v2 = vmul.f32 %v271_v28, %v270_v33 }
 0x1a4   :  { %v200_v38 = vmax.f32 %v199_v35, 0.0  ;;  %v191_v39 = vadd.f32 %v190_v36, %v172_v24  ;;  %v264_v35 = vstv %s1047_s26  ;;  %s1031_s26 = sshll.u32 %s1216_s25, 4  ;;  %s1032_s26 = int_to_ptr.vmem [resolvable:$true] %s1031_s26 }
 0x1a6   :  { %v195_v41 = vadd.f32 %v1324_v37, %v191_v39  ;;  %1121 = vrsqrt.f32 %v200_v38  ;;  %vm213_vm1 = vcmp.eq.f32.partialorder %v200_v38, inf  ;;  %v216_v58 = vand.u32 2147483648, %v200_v38 }
 0x1a7   :  { %vm215_vm4 = vcmp.eq.f32.partialorder %v200_v38, 0.0 }
 0x1a8   :  { %v203_v42 = vsub.f32 %v195_v41, %v202_v40 }
 0x1aa   :  { %v204_v43 = vmul.f32 0.0009775171, %v203_v42 }
 0x1ac   :  { %v1122_v44 = vpop.eup %1121  ;;  %v205_v45 = vmax.f32 %v204_v43, 0.0 }
 0x1ad   :  { %v207_v46 = vmul.f32 %v1122_v44, %v200_v38 }
 0x1ae   :  { %1123 = vrsqrt.f32 %v205_v45  ;;  %vm224_vm3 = vweird.f32 %v205_v45 }
 0x1af   :  { %v208_v47 = vmul.f32 %v1122_v44, %v207_v46 }
 0x1b1   :  { %v209_v48 = vmul.f32 0.5, %v208_v47  ;;  %v283_v47 = vstv %s1062_s27 }
 0x1b3   :  { %v210_v49 = vsub.f32 1.5, %v209_v48 }
 0x1b4   :  { %v1124_v50 = vpop.eup %1123 }
 0x1b5   :  { %v211_v51 = vmul.f32 %v1122_v44, %v210_v49  ;;  %v219_v52 = vmul.f32 %v1124_v50, %v205_v45  ;;  %vm225_vm2 = vweird.f32 %v1124_v50 }
 0x1b6   :  { %vm226_vm5 = vmor %vm224_vm3, %vm225_vm2 }
 0x1b7   :  { %v220_v53 = vmul.f32 %v1124_v50, %v219_v52  ;;  %v212_v54 = vmul.f32 %v211_v51, %v200_v38 }
 0x1b9   :  { %v221_v55 = vmul.f32 0.5, %v220_v53  ;;  %v214_v57 = vsel %vm213_vm1, %v200_v38, %v212_v54  ;;  %v272_v38 = vmul.f32 %v271_v28, %v269_v32 }
 0x1ba   :  { %v217_v60 = vsel %vm215_vm4, %v216_v58, %v214_v57 }
 0x1bb   :  { %v222_v56 = vsub.f32 1.5, %v221_v55 }
 0x1bd   :  { %v223_v59 = vmul.f32 %v1124_v50, %v222_v56 }
 0x1bf   :  { %v227_v61 = vsel %vm226_vm5, %v1124_v50, %v223_v59 }
 0x1c0   :  { %v228_v62 = vmul.f32 %v227_v61, %v217_v60 }
 0x1c2   :  { %v235_v63 = vmul.f32 0.7, %v228_v62 }
 0x1c4   :  { %v236_v3 = vadd.f32 0.3, %v235_v63 }
 0x1c6   :  { %239 = vperm.xlu1 %1119, %v236_v3  }
 0x238   :  { %v240_v13 = vpop.permute.xlu1 %239 }
 0x239   :  { %v242_v20 = vmul.f32 %v240_v13, %v233_v9  ;;  %v243_v21 = vmul.f32 %v240_v13, %v234_v10 }
 0x23b   :  { %v245_v23 = vmul.f32 %v244_v5, %v242_v20  ;;  %v246_v24 = vmul.f32 %v244_v5, %v243_v21  ;;  %v254_v25 = vmul.f32 %v247_v6, %v242_v20  ;;  %v255_v26 = vmul.f32 %v247_v6, %v243_v21 }
 0x23d   :  { %v250_v29 = vadd.f32 %v248_v15, %v245_v23  ;;  %v251_v8 = vadd.f32 %v249_v17, %v246_v24  ;;  %v256_v30 = vsub.f32 %v252_v11, %v254_v25  ;;  %v257_v31 = vsub.f32 %v253_v12, %v255_v26 }
 0x23f   :  { %v259_v0 = vmul.f32 %v258_v7, %v256_v30  ;;  %v260_v36 = vmul.f32 %v258_v7, %v257_v31  ;;  %v265_v40 = vmul.f32 %v264_v35, %v250_v29  ;;  %v266_v41 = vmul.f32 %v264_v35, %v251_v8 }
 0x241   :  { %v262_v39 = vmul.f32 %v261_v34, %v259_v0  ;;  %v263_v42 = vmul.f32 %v261_v34, %v260_v36 }
 0x243   :  { %v267_v43 = vadd.f32 %v265_v40, %v262_v39  ;;  %v268_v44 = vadd.f32 %v266_v41, %v263_v42 }
 0x245   :  { %v1346_v45 = vadd.f32 %v272_v38, %v267_v43  ;;  %v1348_v46 = vadd.f32 %v273_v2, %v268_v44 }
 0x247   :  { %299 = vmatpush.msra.mxu0 %v1346_v45  ;;  %319 = vmatpush.msra.mxu1 %v1348_v46 }
 0x248   :  { %1063 = vmatmul.msk.f32.vlgmr.msra.gmra.mxu0 %vm68_vm0, %v1266_v1  ;;  %1064 = vmatmul.msk.f32.vlgmr.msra.gmra.mxu1 %vm68_vm0, %v1266_v1 }
 0x2c5   :  { %v301_v48 = vpop.f32.mrf.mxu0  ;;  %v321_v49 = vpop.f32.mrf.mxu1 }
 0x2c6   :  { %v1356_v50 = vadd.f32 %v301_v48, %v283_v47  ;;  %v1358_v51 = vadd.f32 %v321_v49, %v283_v47  ;;  %v430_v49 = vstv %s1056_s28 }
 0x2c8   :  { %v324_v52 = vadd.f32 %v1358_v51, %v1356_v50  ;;  %v327_v53 = vmul.f32 %v1356_v50, %v1356_v50  ;;  %v328_v54 = vmul.f32 %v1358_v51, %v1358_v51  ;;  %v419_v47 = vadd.f32 %v1356_v50, %v1329_v4 }
 0x2c9   :  { %v420_v48 = vadd.f32 %v1358_v51, %v1329_v4  ;;  %v444_v51 = vstv %s1058_s30 }
 0x2ca   :  { %325 = vadd.xlane.f32.xlu2 %v324_v52  ;;  %v329_v55 = vadd.f32 %v328_v54, %v327_v53  ;;  %v433_v52 = vstv %s1057_s29  ;;  %s1033_s29 = sshll.u32 %s1551_s6, 4  ;;  %s1034_s29 = int_to_ptr.hbm [resolvable:$true] %s1033_s29 }
 0x2cc   :  { %330 = vadd.xlane.f32.xlu1 %v329_v55 }
 0x33d   :  { %v326_v56 = vpop.xlane.xlu2 %325 }
 0x33e   :  { %347 = vmatpush.msrb.mxu3 %v326_v56  ;;  %v434_v56 = vmul.f32 %v433_v52, %v1346_v45 }
 0x33f   :  { %v331_v57 = vpop.xlane.xlu1 %330  ;;  %1065 = vmatmul.msk.f32.vlgmr.msrb.gmra.mxu3 %vm68_vm0, %v1295_v14 }
 0x340   :  { %373 = vmatpush.msrb.mxu0 %v331_v57  ;;  %v435_v57 = vmul.f32 %v433_v52, %v1348_v46 }
 0x341   :  { %1068 = vmatmul.msk.f32.vlgmr.msrb.gmra.mxu0 %vm68_vm0, %v1295_v14 }
 0x347   :  { %1066 = vmatmul.msk.f32.gmra.mxu3 %vm68_vm0, %v1302_v16 }
 0x34f   :  { %1067 = vmatmul.msk.f32.gmra.mxu3 %vm68_vm0, %v1311_v18 }
 0x3be   :  { %v375_v61 = vpop.f32.mrf.mxu0 }
 0x3c2   :  { %v349_v58 = vpop.f32.mrf.mxu3 }
 0x3c3   :  { %v378_v59 = vadd.f32 %v349_v58, %v1315_v19  ;;  %v382_v5 = vadd.f32 %v349_v58, %v1320_v27  ;;  %v438_v58 = vmul.f32 %v430_v49, %v1346_v45 }
 0x3c5   :  { %v386_v62 = vmul.f32 %v378_v59, %v378_v59  ;;  %v391_v12 = vmul.f32 %v382_v5, %v382_v5  ;;  %v439_v59 = vmul.f32 %v430_v49, %v1348_v46 }
 0x3c7   :  { %v387_v6 = vmul.f32 0.0009765625, %v386_v62  ;;  %v392_v21 = vmul.f32 0.0009765625, %v391_v12  ;;  %v450_v12 = vstv %s1380_s0 }
 0x3ca   :  { %v352_v60 = vpop.f32.mrf.mxu3 }
 0x3cb   :  { %v379_v63 = vmul.f32 2.0, %v352_v60 }
 0x3cd   :  { %v380_v3 = vadd.f32 %v379_v63, %v375_v61  ;;  %v458_v63 = vstv %s1378_s7 }
 0x3cf   :  { %v381_v9 = vadd.f32 %v380_v3, %v1318_v22 }
 0x3d1   :  { %v388_v10 = vsub.f32 %v381_v9, %v387_v6 }
 0x3d2   :  { %v355_v11 = vpop.f32.mrf.mxu3 }
 0x3d3   :  { %v389_v13 = vmul.f32 0.0009775171, %v388_v10  ;;  %v383_v15 = vmul.f32 2.0, %v355_v11  ;;  %v456_v10 = vld [vmem:[#allocation6 + $0x10] sm:$0xff]  ;;  %v457_v11 = vld [vmem:[#allocation6 + $0x18] sm:$0xff] }
 0x3d4   :  { %v460_v45 = vmul.f32 %v458_v63, %v457_v11 }
 0x3d5   :  { %v390_v17 = vmax.f32 %v389_v13, 0.0  ;;  %v384_v20 = vadd.f32 %v383_v15, %v375_v61  ;;  %v447_v13 = vstv %s1382_s8 }
 0x3d7   :  { %v385_v23 = vadd.f32 %v384_v20, %v1324_v37  ;;  %1125 = vrsqrt.f32 %v390_v17  ;;  %vm403_vm6 = vcmp.eq.f32.partialorder %v390_v17, inf  ;;  %v406_v2 = vand.u32 2147483648, %v390_v17 }
 0x3d8   :  { %vm405_vm9 = vcmp.eq.f32.partialorder %v390_v17, 0.0  ;;  %v459_v20 = vmul.f32 %v458_v63, %v456_v10 }
 0x3d9   :  { %v393_v24 = vsub.f32 %v385_v23, %v392_v21 }
 0x3db   :  { %v394_v25 = vmul.f32 0.0009775171, %v393_v24 }
 0x3dd   :  { %v1126_v26 = vpop.eup %1125  ;;  %v395_v7 = vmax.f32 %v394_v25, 0.0 }
 0x3de   :  { %v397_v28 = vmul.f32 %v1126_v26, %v390_v17 }
 0x3df   :  { %1127 = vrsqrt.f32 %v395_v7  ;;  %vm414_vm8 = vweird.f32 %v395_v7 }
 0x3e0   :  { %v398_v29 = vmul.f32 %v1126_v26, %v397_v28 }
 0x3e2   :  { %v399_v8 = vmul.f32 0.5, %v398_v29  ;;  %v470_v29 = vstv %s1075_s2 }
 0x3e4   :  { %v400_v30 = vsub.f32 1.5, %v399_v8 }
 0x3e5   :  { %v1128_v31 = vpop.eup %1127 }
 0x3e6   :  { %v409_v32 = vmul.f32 %v1128_v31, %v395_v7  ;;  %v401_v33 = vmul.f32 %v1126_v26, %v400_v30  ;;  %vm415_vm7 = vweird.f32 %v1128_v31 }
 0x3e7   :  { %vm416_vm10 = vmor %vm414_vm8, %vm415_vm7 }
 0x3e8   :  { %v410_v34 = vmul.f32 %v1128_v31, %v409_v32  ;;  %v402_v35 = vmul.f32 %v401_v33, %v390_v17 }
 0x3ea   :  { %v411_v0 = vmul.f32 0.5, %v410_v34  ;;  %v404_v38 = vsel %vm403_vm6, %v390_v17, %v402_v35 }
 0x3eb   :  { %v407_v40 = vsel %vm405_vm9, %v406_v2, %v404_v38 }
 0x3ec   :  { %v412_v36 = vsub.f32 1.5, %v411_v0 }
 0x3ee   :  { %v413_v39 = vmul.f32 %v1128_v31, %v412_v36 }
 0x3f0   :  { %v417_v41 = vsel %vm416_vm10, %v1128_v31, %v413_v39 }
 0x3f1   :  { %v418_v42 = vmul.f32 %v417_v41, %v407_v40 }
 0x3f3   :  { %v421_v43 = vmul.f32 0.7, %v418_v42 }
 0x3f5   :  { %v422_v44 = vadd.f32 0.3, %v421_v43 }
 0x3f7   :  { %425 = vperm.xlu0 %1118, %v422_v44  }
 0x469   :  { %v426_v53 = vpop.permute.xlu0 %425 }
 0x46a   :  { %v428_v54 = vmul.f32 %v426_v53, %v419_v47  ;;  %v429_v55 = vmul.f32 %v426_v53, %v420_v48 }
 0x46c   :  { %v431_v50 = vmul.f32 %v430_v49, %v428_v54  ;;  %v432_v60 = vmul.f32 %v430_v49, %v429_v55  ;;  %v440_v61 = vmul.f32 %v433_v52, %v428_v54  ;;  %v441_v62 = vmul.f32 %v433_v52, %v429_v55 }
 0x46e   :  { %v436_v3 = vadd.f32 %v434_v56, %v431_v50  ;;  %v437_v5 = vadd.f32 %v435_v57, %v432_v60  ;;  %v442_v6 = vsub.f32 %v438_v58, %v440_v61  ;;  %v443_v9 = vsub.f32 %v439_v59, %v441_v62 }
 0x470   :  { %v445_v15 = vmul.f32 %v444_v51, %v442_v6  ;;  %v446_v17 = vmul.f32 %v444_v51, %v443_v9  ;;  %v451_v21 = vmul.f32 %v450_v12, %v436_v3  ;;  %v452_v46 = vmul.f32 %v450_v12, %v437_v5 }
 0x472   :  { %v448_v23 = vmul.f32 %v447_v13, %v445_v15  ;;  %v449_v24 = vmul.f32 %v447_v13, %v446_v17 }
 0x474   :  { %v453_v25 = vadd.f32 %v451_v21, %v448_v23  ;;  %v454_v26 = vadd.f32 %v452_v46, %v449_v24 }
 0x476   :  { %v1395_v7 = vadd.f32 %v459_v20, %v453_v25  ;;  %v1397_v28 = vadd.f32 %v460_v45, %v454_v26 }
 0x478   :  { %486 = vmatpush.msrb.mxu1 %v1395_v7  ;;  %506 = vmatpush.msra.mxu0 %v1397_v28 }
 0x479   :  { %1076 = vmatmul.msk.f32.vlgmr.msrb.gmra.mxu1 %vm68_vm0, %v1266_v1  ;;  %1077 = vmatmul.msk.f32.vlgmr.msra.gmra.mxu0 %vm68_vm0, %v1266_v1 }
 0x4f6   :  { %v488_v8 = vpop.f32.mrf.mxu1  ;;  %v508_v30 = vpop.f32.mrf.mxu0 }
 0x4f7   :  { %v1405_v31 = vadd.f32 %v488_v8, %v470_v29  ;;  %v1407_v32 = vadd.f32 %v508_v30, %v470_v29  ;;  %v617_v30 = vstv %s1069_s9 }
 0x4f9   :  { %v511_v33 = vadd.f32 %v1407_v32, %v1405_v31  ;;  %v514_v34 = vmul.f32 %v1405_v31, %v1405_v31  ;;  %v515_v35 = vmul.f32 %v1407_v32, %v1407_v32  ;;  %v606_v29 = vadd.f32 %v1405_v31, %v1329_v4 }
 0x4fa   :  { %v607_v8 = vadd.f32 %v1407_v32, %v1329_v4  ;;  %v631_v32 = vstv %s1071_s11 }
 0x4fb   :  { %512 = vadd.xlane.f32.xlu2 %v511_v33  ;;  %v516_v0 = vadd.f32 %v515_v35, %v514_v34  ;;  %v620_v33 = vstv %s1070_s10 }
 0x4fd   :  { %517 = vadd.xlane.f32.xlu0 %v516_v0 }
 0x56e   :  { %v513_v36 = vpop.xlane.xlu2 %512 }
 0x56f   :  { %534 = vmatpush.msra.mxu1 %v513_v36  ;;  %v621_v36 = vmul.f32 %v620_v33, %v1395_v7 }
 0x570   :  { %v518_v38 = vpop.xlane.xlu0 %517  ;;  %1078 = vmatmul.msk.f32.vlgmr.msra.gmra.mxu1 %vm68_vm0, %v1295_v14 }
 0x571   :  { %560 = vmatpush.msrb.mxu2 %v518_v38  ;;  %v622_v38 = vmul.f32 %v620_v33, %v1397_v28 }
 0x572   :  { %1081 = vmatmul.msk.f32.vlgmr.msrb.gmra.mxu2 %vm68_vm0, %v1295_v14 }
 0x578   :  { %1079 = vmatmul.msk.f32.gmra.mxu1 %vm68_vm0, %v1302_v16 }
 0x580   :  { %1080 = vmatmul.msk.f32.gmra.mxu1 %vm68_vm0, %v1311_v18 }
 0x5ed   :  { %v536_v2 = vpop.f32.mrf.mxu1 }
 0x5ee   :  { %v565_v39 = vadd.f32 %v536_v2, %v1315_v19  ;;  %v569_v47 = vadd.f32 %v536_v2, %v1320_v27  ;;  %v625_v2 = vmul.f32 %v617_v30, %v1395_v7 }
 0x5f0   :  { %v573_v42 = vmul.f32 %v565_v39, %v565_v39  ;;  %v578_v54 = vmul.f32 %v569_v47, %v569_v47  ;;  %v626_v39 = vmul.f32 %v617_v30, %v1397_v28 }
 0x5f2   :  { %v574_v48 = vmul.f32 0.0009765625, %v573_v42  ;;  %v579_v59 = vmul.f32 0.0009765625, %v578_v54  ;;  %v634_v54 = vstv %s1429_s1 }
 0x5f5   :  { %v539_v40 = vpop.f32.mrf.mxu1  ;;  %v562_v41 = vpop.f32.mrf.mxu2 }
 0x5f6   :  { %v566_v43 = vmul.f32 2.0, %v539_v40 }
 0x5f8   :  { %v567_v44 = vadd.f32 %v566_v43, %v562_v41  ;;  %v645_v43 = vstv %s1427_s3 }
 0x5fa   :  { %v568_v49 = vadd.f32 %v567_v44, %v1318_v22 }
 0x5fc   :  { %v575_v52 = vsub.f32 %v568_v49, %v574_v48 }
 0x5fd   :  { %v542_v53 = vpop.f32.mrf.mxu1 }
 0x5fe   :  { %v576_v55 = vmul.f32 0.0009775171, %v575_v52  ;;  %v570_v56 = vmul.f32 2.0, %v542_v53  ;;  %v643_v52 = vld [vmem:[#allocation6 + $0x20] sm:$0xff]  ;;  %v644_v53 = vld [vmem:[#allocation6 + $0x28] sm:$0xff] }
 0x5ff   :  { %v647_v7 = vmul.f32 %v645_v43, %v644_v53 }
 0x600   :  { %v577_v57 = vmax.f32 %v576_v55, 0.0  ;;  %v571_v58 = vadd.f32 %v570_v56, %v562_v41  ;;  %v637_v55 = vstv %s1431_s12 }
 0x602   :  { %v572_v50 = vadd.f32 %v571_v58, %v1324_v37  ;;  %1129 = vrsqrt.f32 %v577_v57  ;;  %vm590_vm11 = vcmp.eq.f32.partialorder %v577_v57, inf  ;;  %v593_v45 = vand.u32 2147483648, %v577_v57 }
 0x603   :  { %vm592_vm14 = vcmp.eq.f32.partialorder %v577_v57, 0.0  ;;  %v646_v58 = vmul.f32 %v645_v43, %v643_v52 }
 0x604   :  { %v580_v60 = vsub.f32 %v572_v50, %v579_v59 }
 0x606   :  { %v581_v61 = vmul.f32 0.0009775171, %v580_v60 }
 0x608   :  { %v1130_v62 = vpop.eup %1129  ;;  %v582_v51 = vmax.f32 %v581_v61, 0.0 }
 0x609   :  { %v584_v63 = vmul.f32 %v1130_v62, %v577_v57 }
 0x60a   :  { %1131 = vrsqrt.f32 %v582_v51  ;;  %vm601_vm13 = vweird.f32 %v582_v51 }
 0x60b   :  { %v585_v3 = vmul.f32 %v1130_v62, %v584_v63 }
 0x60d   :  { %v586_v5 = vmul.f32 0.5, %v585_v3  ;;  %v657_v3 = vstv %s1088_s13 }
 0x60f   :  { %v587_v6 = vsub.f32 1.5, %v586_v5 }
 0x610   :  { %v1132_v9 = vpop.eup %1131 }
 0x611   :  { %v596_v10 = vmul.f32 %v1132_v9, %v582_v51  ;;  %v588_v11 = vmul.f32 %v1130_v62, %v587_v6  ;;  %vm602_vm12 = vweird.f32 %v1132_v9 }
 0x612   :  { %vm603_vm15 = vmor %vm601_vm13, %vm602_vm12 }
 0x613   :  { %v597_v12 = vmul.f32 %v1132_v9, %v596_v10  ;;  %v589_v13 = vmul.f32 %v588_v11, %v577_v57 }
 0x615   :  { %v598_v15 = vmul.f32 0.5, %v597_v12  ;;  %v591_v20 = vsel %vm590_vm11, %v577_v57, %v589_v13 }
 0x616   :  { %v594_v46 = vsel %vm592_vm14, %v593_v45, %v591_v20 }
 0x617   :  { %v599_v17 = vsub.f32 1.5, %v598_v15 }
 0x619   :  { %v600_v21 = vmul.f32 %v1132_v9, %v599_v17 }
 0x61b   :  { %v604_v23 = vsel %vm603_vm15, %v1132_v9, %v600_v21 }
 0x61c   :  { %v605_v24 = vmul.f32 %v604_v23, %v594_v46 }
 0x61e   :  { %v608_v25 = vmul.f32 0.7, %v605_v24 }
 0x620   :  { %v609_v26 = vadd.f32 0.3, %v608_v25 }
 0x622   :  { %612 = vperm.xlu2 %1120, %v609_v26  }
 0x67c   :  { %v613_v34 = vpop.permute.xlu2 %612 }
 0x67d   :  { %v615_v35 = vmul.f32 %v613_v34, %v606_v29  ;;  %v616_v0 = vmul.f32 %v613_v34, %v607_v8 }
 0x67f   :  { %v618_v31 = vmul.f32 %v617_v30, %v615_v35  ;;  %v619_v40 = vmul.f32 %v617_v30, %v616_v0  ;;  %v627_v41 = vmul.f32 %v620_v33, %v615_v35  ;;  %v628_v42 = vmul.f32 %v620_v33, %v616_v0 }
 0x681   :  { %v623_v44 = vadd.f32 %v621_v36, %v618_v31  ;;  %v624_v47 = vadd.f32 %v622_v38, %v619_v40  ;;  %v629_v48 = vsub.f32 %v625_v2, %v627_v41  ;;  %v630_v49 = vsub.f32 %v626_v39, %v628_v42 }
 0x683   :  { %v632_v56 = vmul.f32 %v631_v32, %v629_v48  ;;  %v633_v57 = vmul.f32 %v631_v32, %v630_v49  ;;  %v638_v50 = vmul.f32 %v637_v55, %v623_v44  ;;  %v639_v60 = vmul.f32 %v637_v55, %v624_v47 }
 0x685   :  { %v635_v59 = vmul.f32 %v634_v54, %v632_v56  ;;  %v636_v28 = vmul.f32 %v634_v54, %v633_v57 }
 0x687   :  { %v640_v61 = vadd.f32 %v638_v50, %v635_v59  ;;  %v641_v62 = vadd.f32 %v639_v60, %v636_v28 }
 0x689   :  { %v1444_v51 = vadd.f32 %v646_v58, %v640_v61  ;;  %v1446_v63 = vadd.f32 %v647_v7, %v641_v62 }
 0x68b   :  { %673 = vmatpush.msrb.mxu0 %v1444_v51  ;;  %693 = vmatpush.msra.mxu2 %v1446_v63 }
 0x68c   :  { %1089 = vmatmul.msk.f32.vlgmr.msrb.gmra.mxu0 %vm68_vm0, %v1266_v1  ;;  %1090 = vmatmul.msk.f32.vlgmr.msra.gmra.mxu2 %vm68_vm0, %v1266_v1 }
 0x709   :  { %v675_v5 = vpop.f32.mrf.mxu0 }
 0x70a   :  { %v1454_v9 = vadd.f32 %v675_v5, %v657_v3 }
 0x70c   :  { %v701_v12 = vmul.f32 %v1454_v9, %v1454_v9 }
 0x70f   :  { %v695_v6 = vpop.f32.mrf.mxu2 }
 0x710   :  { %v1456_v10 = vadd.f32 %v695_v6, %v657_v3  ;;  %v793_v3 = vadd.f32 %v1454_v9, %v1329_v4  ;;  %v804_v6 = vstv %s1082_s14 }
 0x712   :  { %v698_v11 = vadd.f32 %v1456_v10, %v1454_v9  ;;  %v702_v13 = vmul.f32 %v1456_v10, %v1456_v10  ;;  %v794_v5 = vadd.f32 %v1456_v10, %v1329_v4  ;;  %v818_v10 = vstv %s1084_s16 }
 0x714   :  { %699 = vadd.xlane.f32.xlu1 %v698_v11  ;;  %v703_v15 = vadd.f32 %v702_v13, %v701_v12  ;;  %v807_v11 = vstv %s1083_s15 }
 0x71c   :  { %704 = vadd.xlane.f32.xlu1 %v703_v15 }
 0x787   :  { %v700_v17 = vpop.xlane.xlu1 %699 }
 0x788   :  { %721 = vmatpush.msra.mxu3 %v700_v17  ;;  %v808_v17 = vmul.f32 %v807_v11, %v1444_v51 }
 0x789   :  { %1091 = vmatmul.msk.f32.vlgmr.msra.gmra.mxu3 %vm68_vm0, %v1295_v14 }
 0x78f   :  { %v705_v20 = vpop.xlane.xlu1 %704 }
 0x790   :  { %747 = vmatpush.msra.mxu0 %v705_v20  ;;  %v809_v20 = vmul.f32 %v807_v11, %v1446_v63 }
 0x791   :  { %1092 = vmatmul.msk.f32.gmra.mxu3 %vm68_vm0, %v1302_v16  ;;  %1094 = vmatmul.msk.f32.vlgmr.msra.gmra.mxu0 %vm68_vm0, %v1295_v14 }
 0x799   :  { %1093 = vmatmul.msk.f32.gmra.mxu3 %vm68_vm0, %v1311_v18 }
 0x80c   :  { %v723_v45 = vpop.f32.mrf.mxu3 }
 0x80d   :  { %v752_v21 = vadd.f32 %v723_v45, %v1315_v19  ;;  %v756_v29 = vadd.f32 %v723_v45, %v1320_v27  ;;  %v812_v45 = vmul.f32 %v804_v6, %v1444_v51 }
 0x80e   :  { %v749_v23 = vpop.f32.mrf.mxu0 }
 0x80f   :  { %v760_v24 = vmul.f32 %v752_v21, %v752_v21  ;;  %v765_v35 = vmul.f32 %v756_v29, %v756_v29  ;;  %v813_v21 = vmul.f32 %v804_v6, %v1446_v63 }
 0x811   :  { %v761_v8 = vmul.f32 0.0009765625, %v760_v24  ;;  %v766_v39 = vmul.f32 0.0009765625, %v765_v35  ;;  %v821_v35 = vstv %s1478_s17 }
 0x814   :  { %v726_v46 = vpop.f32.mrf.mxu3 }
 0x815   :  { %v753_v25 = vmul.f32 2.0, %v726_v46 }
 0x817   :  { %v754_v26 = vadd.f32 %v753_v25, %v749_v23  ;;  %v832_v25 = vstv %s1476_s5 }
 0x819   :  { %v755_v30 = vadd.f32 %v754_v26, %v1318_v22 }
 0x81b   :  { %v762_v33 = vsub.f32 %v755_v30, %v761_v8 }
 0x81c   :  { %v729_v34 = vpop.f32.mrf.mxu3 }
 0x81d   :  { %v763_v0 = vmul.f32 0.0009775171, %v762_v33  ;;  %v757_v36 = vmul.f32 2.0, %v729_v34  ;;  %v830_v33 = vld [vmem:[#allocation6 + $0x30] sm:$0xff]  ;;  %v831_v34 = vld [vmem:[#allocation6 + $0x38] sm:$0xff] }
 0x81e   :  { %v834_v51 = vmul.f32 %v832_v25, %v831_v34 }
 0x81f   :  { %v764_v38 = vmax.f32 %v763_v0, 0.0  ;;  %v758_v2 = vadd.f32 %v757_v36, %v749_v23  ;;  %v824_v0 = vstv %s1480_s18 }
 0x821   :  { %v759_v31 = vadd.f32 %v758_v2, %v1324_v37  ;;  %1133 = vrsqrt.f32 %v764_v38  ;;  %vm777_vm1 = vcmp.eq.f32.partialorder %v764_v38, inf  ;;  %v780_v7 = vand.u32 2147483648, %v764_v38 }
 0x822   :  { %vm779_vm4 = vcmp.eq.f32.partialorder %v764_v38, 0.0  ;;  %v833_v2 = vmul.f32 %v832_v25, %v830_v33 }
 0x823   :  { %v767_v40 = vsub.f32 %v759_v31, %v766_v39 }
 0x825   :  { %v768_v41 = vmul.f32 0.0009775171, %v767_v40 }
 0x827   :  { %v1134_v42 = vpop.eup %1133  ;;  %v769_v32 = vmax.f32 %v768_v41, 0.0 }
 0x828   :  { %v771_v43 = vmul.f32 %v1134_v42, %v764_v38 }
 0x829   :  { %1135 = vrsqrt.f32 %v769_v32  ;;  %vm788_vm3 = vweird.f32 %v769_v32 }
 0x82a   :  { %v772_v44 = vmul.f32 %v1134_v42, %v771_v43 }
 0x82c   :  { %v773_v47 = vmul.f32 0.5, %v772_v44  ;;  %v844_v44 = vstv %s1101_s19 }
 0x82e   :  { %v774_v48 = vsub.f32 1.5, %v773_v47 }
 0x82f   :  { %v1136_v49 = vpop.eup %1135 }
 0x830   :  { %v783_v52 = vmul.f32 %v1136_v49, %v769_v32  ;;  %v775_v53 = vmul.f32 %v1134_v42, %v774_v48  ;;  %vm789_vm2 = vweird.f32 %v1136_v49 }
 0x831   :  { %vm790_vm5 = vmor %vm788_vm3, %vm789_vm2 }
 0x832   :  { %v784_v54 = vmul.f32 %v1136_v49, %v783_v52  ;;  %v776_v55 = vmul.f32 %v775_v53, %v764_v38 }
 0x834   :  { %v785_v56 = vmul.f32 0.5, %v784_v54  ;;  %v778_v58 = vsel %vm777_vm1, %v764_v38, %v776_v55 }
 0x835   :  { %v781_v28 = vsel %vm779_vm4, %v780_v7, %v778_v58 }
 0x836   :  { %v786_v57 = vsub.f32 1.5, %v785_v56 }
 0x838   :  { %v787_v59 = vmul.f32 %v1136_v49, %v786_v57 }
 0x83a   :  { %v791_v50 = vsel %vm790_vm5, %v1136_v49, %v787_v59 }
 0x83b   :  { %v792_v60 = vmul.f32 %v791_v50, %v781_v28 }
 0x83d   :  { %v795_v61 = vmul.f32 0.7, %v792_v60 }
 0x83f   :  { %v796_v62 = vadd.f32 0.3, %v795_v61 }
 0x841   :  { %799 = vperm.xlu1 %1119, %v796_v62  }
 0x8b3   :  { %v800_v12 = vpop.permute.xlu1 %799 }
 0x8b4   :  { %v802_v13 = vmul.f32 %v800_v12, %v793_v3  ;;  %v803_v15 = vmul.f32 %v800_v12, %v794_v5 }
 0x8b6   :  { %v805_v9 = vmul.f32 %v804_v6, %v802_v13  ;;  %v806_v46 = vmul.f32 %v804_v6, %v803_v15  ;;  %v814_v23 = vmul.f32 %v807_v11, %v802_v13  ;;  %v815_v24 = vmul.f32 %v807_v11, %v803_v15 }
 0x8b8   :  { %v810_v26 = vadd.f32 %v808_v17, %v805_v9  ;;  %v811_v29 = vadd.f32 %v809_v20, %v806_v46  ;;  %v816_v8 = vsub.f32 %v812_v45, %v814_v23  ;;  %v817_v30 = vsub.f32 %v813_v21, %v815_v24 }
 0x8ba   :  { %v819_v36 = vmul.f32 %v818_v10, %v816_v8  ;;  %v820_v38 = vmul.f32 %v818_v10, %v817_v30  ;;  %v825_v31 = vmul.f32 %v824_v0, %v810_v26  ;;  %v826_v40 = vmul.f32 %v824_v0, %v811_v29 }
 0x8bc   :  { %v822_v39 = vmul.f32 %v821_v35, %v819_v36  ;;  %v823_v63 = vmul.f32 %v821_v35, %v820_v38 }
 0x8be   :  { %v827_v41 = vadd.f32 %v825_v31, %v822_v39  ;;  %v828_v42 = vadd.f32 %v826_v40, %v823_v63  ;;  %v991_v39 = vstv %s1095_s20  ;;  %v994_v63 = vstv %s1096_s21 }
 0x8c0   :  { %v1493_v32 = vadd.f32 %v833_v2, %v827_v41  ;;  %v1495_v43 = vadd.f32 %v834_v51, %v828_v42 }
 0x8c2   :  { %860 = vmatpush.msrb.mxu2 %v1493_v32  ;;  %880 = vmatpush.msrb.mxu0 %v1495_v43  ;;  %v995_v42 = vmul.f32 %v994_v63, %v1493_v32 }
 0x8c3   :  { %1102 = vmatmul.msk.f32.vlgmr.msrb.gmra.mxu2 %vm68_vm0, %v1266_v1  ;;  %1103 = vmatmul.msk.f32.vlgmr.msrb.gmra.mxu0 %vm68_vm0, %v1266_v1 }
 0x940   :  { %v882_v47 = vpop.f32.mrf.mxu0 }
 0x941   :  { %v1503_v48 = vadd.f32 %v882_v47, %v844_v44  ;;  %v999_v47 = vmul.f32 %v991_v39, %v1493_v32 }
 0x943   :  { %v889_v53 = vmul.f32 %v1503_v48, %v1503_v48  ;;  %v981_v51 = vadd.f32 %v1503_v48, %v1329_v4 }
 0x946   :  { %v862_v49 = vpop.f32.mrf.mxu2 }
 0x947   :  { %v1505_v52 = vadd.f32 %v862_v49, %v844_v44  ;;  %v996_v44 = vmul.f32 %v994_v63, %v1495_v43  ;;  %v1000_v49 = vmul.f32 %v991_v39, %v1495_v43 }
 0x949   :  { %v885_v54 = vadd.f32 %v1503_v48, %v1505_v52  ;;  %v888_v55 = vmul.f32 %v1505_v52, %v1505_v52  ;;  %v980_v2 = vadd.f32 %v1505_v52, %v1329_v4  ;;  %v1005_v4 = vstv %s1097_s4 }
 0x94a   :  { %v1019_v48 = vstv %s1525_s22 }
 0x94b   :  { %886 = vadd.xlane.f32.xlu2 %v885_v54  ;;  %v890_v56 = vadd.f32 %v889_v53, %v888_v55 }
 0x94d   :  { %891 = vadd.xlane.f32.xlu0 %v890_v56 }
 0x9be   :  { %v887_v1 = vpop.xlane.xlu2 %886 }
 0x9bf   :  { %908 = vmatpush.msrb.mxu1 %v887_v1 }
 0x9c0   :  { %v892_v57 = vpop.xlane.xlu0 %891  ;;  %1104 = vmatmul.msk.f32.vlgmr.msrb.gmra.mxu1 %vm68_vm0, %v1295_v14 }
 0x9c1   :  { %934 = vmatpush.msra.mxu2 %v892_v57 }
 0x9c2   :  { %1107 = vmatmul.msk.f32.vlgmr.msra.gmra.mxu2 %vm68_vm0, %v1295_v14 }
 0x9c8   :  { %1105 = vmatmul.msk.f32.gmra.mxu1 %vm68_vm0, %v1302_v16 }
 0x9d0   :  { %1106 = vmatmul.msk.f32.gmra.mxu1 %vm68_vm0, %v1311_v18 }
 0xa3d   :  { %v910_v58 = vpop.f32.mrf.mxu1 }
 0xa3e   :  { %v939_v7 = vadd.f32 %v910_v58, %v1315_v19  ;;  %v943_v62 = vadd.f32 %v910_v58, %v1320_v27 }
 0xa40   :  { %v947_v50 = vmul.f32 %v939_v7, %v939_v7  ;;  %v952_v11 = vmul.f32 %v943_v62, %v943_v62  ;;  %v1017_v7 = vld [vmem:[#allocation6 + $0x40] sm:$0xff] }
 0xa41   :  { %v1020_v62 = vmul.f32 %v1019_v48, %v1017_v7 }
 0xa42   :  { %v948_v3 = vmul.f32 0.0009765625, %v947_v50  ;;  %v953_v15 = vmul.f32 0.0009765625, %v952_v11  ;;  %v1008_v50 = vstv %s1529_s24 }
 0xa45   :  { %v913_v59 = vpop.f32.mrf.mxu1  ;;  %v936_v28 = vpop.f32.mrf.mxu2 }
 0xa46   :  { %v940_v60 = vmul.f32 2.0, %v913_v59  ;;  %v1018_v59 = vld [vmem:[#allocation6 + $0x48] sm:$0xff] }
 0xa47   :  { %v1021_v32 = vmul.f32 %v1019_v48, %v1018_v59 }
 0xa48   :  { %v941_v61 = vadd.f32 %v940_v60, %v936_v28 }
 0xa4a   :  { %v942_v5 = vadd.f32 %v941_v61, %v1318_v22 }
 0xa4c   :  { %v949_v14 = vsub.f32 %v942_v5, %v948_v3 }
 0xa4d   :  { %v916_v6 = vpop.f32.mrf.mxu1 }
 0xa4e   :  { %v950_v16 = vmul.f32 0.0009775171, %v949_v14  ;;  %v944_v12 = vmul.f32 2.0, %v916_v6 }
 0xa50   :  { %v951_v13 = vmax.f32 %v950_v16, 0.0  ;;  %v945_v18 = vadd.f32 %v944_v12, %v936_v28  ;;  %v1011_v28 = vstv %s1527_s23 }
 0xa52   :  { %1137 = vrsqrt.f32 %v951_v13  ;;  %v946_v19 = vadd.f32 %v945_v18, %v1324_v37  ;;  %vm964_vm0 = vcmp.eq.f32.partialorder %v951_v13, inf  ;;  %v967_v37 = vand.u32 2147483648, %v951_v13 }
 0xa53   :  { %vm966_vm8 = vcmp.eq.f32.partialorder %v951_v13, 0.0 }
 0xa54   :  { %v954_v17 = vsub.f32 %v946_v19, %v953_v15 }
 0xa56   :  { %v955_v20 = vmul.f32 0.0009775171, %v954_v17 }
 0xa58   :  { %v1138_v45 = vpop.eup %1137  ;;  %v956_v21 = vmax.f32 %v955_v20, 0.0 }
 0xa59   :  { %v958_v9 = vmul.f32 %v1138_v45, %v951_v13 }
 0xa5a   :  { %1139 = vrsqrt.f32 %v956_v21  ;;  %vm975_vm7 = vweird.f32 %v956_v21 }
 0xa5b   :  { %v959_v27 = vmul.f32 %v1138_v45, %v958_v9 }
 0xa5d   :  { %v960_v46 = vmul.f32 0.5, %v959_v27 }
 0xa5f   :  { %v961_v22 = vsub.f32 1.5, %v960_v46 }
 0xa60   :  { %v1140_v23 = vpop.eup %1139 }
 0xa61   :  { %v970_v24 = vmul.f32 %v1140_v23, %v956_v21  ;;  %v962_v10 = vmul.f32 %v1138_v45, %v961_v22  ;;  %vm976_vm6 = vweird.f32 %v1140_v23 }
 0xa62   :  { %vm977_vm9 = vmor %vm975_vm7, %vm976_vm6 }
 0xa63   :  { %v971_v25 = vmul.f32 %v1140_v23, %v970_v24  ;;  %v963_v26 = vmul.f32 %v962_v10, %v951_v13 }
 0xa65   :  { %v972_v29 = vmul.f32 0.5, %v971_v25  ;;  %v965_v30 = vsel %vm964_vm0, %v951_v13, %v963_v26 }
 0xa66   :  { %v968_v34 = vsel %vm966_vm8, %v967_v37, %v965_v30 }
 0xa67   :  { %v973_v8 = vsub.f32 1.5, %v972_v29 }
 0xa69   :  { %v974_v33 = vmul.f32 %v1140_v23, %v973_v8 }
 0xa6b   :  { %v978_v35 = vsel %vm977_vm9, %v1140_v23, %v974_v33 }
 0xa6c   :  { %v979_v0 = vmul.f32 %v978_v35, %v968_v34 }
 0xa6e   :  { %v982_v36 = vmul.f32 0.7, %v979_v0 }
 0xa70   :  { %v983_v38 = vadd.f32 0.3, %v982_v36 }
 0xa72   :  { %986 = vperm.xlu1 %1119, %v983_v38  }
 0xae4   :  { %v987_v31 = vpop.permute.xlu1 %986 }
 0xae5   :  { %v989_v40 = vmul.f32 %v987_v31, %v980_v2  ;;  %v990_v41 = vmul.f32 %v987_v31, %v981_v51 }
 0xae7   :  { %v992_v52 = vmul.f32 %v991_v39, %v989_v40  ;;  %v993_v53 = vmul.f32 %v991_v39, %v990_v41  ;;  %v1001_v54 = vmul.f32 %v994_v63, %v989_v40  ;;  %v1002_v55 = vmul.f32 %v994_v63, %v990_v41 }
 0xae9   :  { %v997_v56 = vadd.f32 %v995_v42, %v992_v52  ;;  %v998_v1 = vadd.f32 %v996_v44, %v993_v53  ;;  %v1003_v57 = vsub.f32 %v999_v47, %v1001_v54  ;;  %v1004_v58 = vsub.f32 %v1000_v49, %v1002_v55 }
 0xaeb   :  { %v1006_v60 = vmul.f32 %v1005_v4, %v1003_v57  ;;  %v1007_v61 = vmul.f32 %v1005_v4, %v1004_v58  ;;  %v1012_v3 = vmul.f32 %v1011_v28, %v997_v56  ;;  %v1013_v43 = vmul.f32 %v1011_v28, %v998_v1 }
 0xaed   :  { %v1009_v5 = vmul.f32 %v1008_v50, %v1006_v60  ;;  %v1010_v14 = vmul.f32 %v1008_v50, %v1007_v61 }
 0xaef   :  { %v1014_v6 = vadd.f32 %v1012_v3, %v1009_v5  ;;  %v1015_v11 = vadd.f32 %v1013_v43, %v1010_v14 }
 0xaf1   :  { %v1022_v16 = vadd.f32 %v1020_v62, %v1014_v6  ;;  %v1023_v12 = vadd.f32 %v1021_v32, %v1015_v11 }
 0xaf3   :  { %1024 = vst [vmem:[#allocation7] sm:$0xff] %v1022_v16 }
 0xaf4   :  { %1025 = vst [vmem:[#allocation7 + $0x8] sm:$0xff] %v1023_v12 }
 0xaf5   :  { %1036 = dma.vmem_to_hbm [thread:$0]  %s1032_s26, 256, %s1034_s29, [#allocation4]  }
 0xaf6   :  { %1205 = dma.done.wait [#allocation4], 256  }
 0xaf7   :  { %1206 = vsyncadd [#allocation4], 4294967040 }
 0xaf8   :  { %1041 = vsyncpa [#allocation3], 1 }
 0xaf9   :  { %1042 = vsyncpa [#allocation4], 1 }
 0xafa   :  { %1043 = vsyncpa [#allocation5], 1 }

</bundles_post_ra>
